<compile_context>
chip_gen: v7x
topology: tpu7x:2x2x1
jax: 0.10.0
libtpu: 0.0.40
codegen_flags: <defaults>
</compile_context>

<pallas_src>
import functools

import jax
import jax.numpy as jnp
from jax.experimental import pallas as pl
from jax.experimental.pallas import tpu as pltpu

EPS = 1e-5


# ------------------------------ fused kernel -------------------------------

def _fused_kernel(bsz, lhs1_ref, w1t_ref, s1_ref, t1_ref,
                  w2t_ref, b2_ref, s2_ref, t2_ref,
                  w0_ref, b0_ref, sf_ref, tf_ref,
                  wf1_ref, bf1_ref, wcat_ref, b2f_ref,
                  out_ref, h_ref):
    f32 = jnp.float32
    NP = h_ref.shape[0]                  # padded branch-sample count (multiple of 8)

    # ---- conv1 (bias folded into the lhs ones-column) + ReLU: one MXU op.
    #      rows: (yo%2, yo//2, n)   lanes: (xo%2)*128 + (xo//2)*16 + c
    a1 = jnp.maximum(
        jnp.dot(lhs1_ref[...], w1t_ref[...], preferred_element_type=f32), 0.0)

    # ---- 2x2 max-pool #1: both steps are maxes of contiguous halves (dense).
    hrows = a1.shape[0] // 2
    m1 = jnp.maximum(a1[:hrows], a1[hrows:])          # (8*NP,256) rows (yh, n)
    p1 = jnp.maximum(m1[:, :128], m1[:, 128:])        # (8*NP,128) lanes xh*16 + c

    # ---- BatchNorm2d #1 (eval) as per-channel affine on a dense tile.
    b1v = p1 * s1_ref[...] + t1_ref[...]

    # ---- conv2 lhs: K = (dy, xh, c) = 4*128, built with aligned concats only.
    zrows = jnp.zeros((2 * NP, 128), f32)
    padded = jnp.concatenate([zrows, b1v, zrows], axis=0)            # y zero-pad
    lhs2 = jnp.concatenate(
        [padded[dy * NP:(dy + 8) * NP] for dy in range(4)], axis=1)  # (8*NP,512)

    # ---- conv2 (Toeplitz over x2; only the 8x8 window the floor-pool uses)
    #      + bias + ReLU.  rows (y2, n), lanes (x2%2)*128 + (x2//2)*32 + co
    a2 = jnp.maximum(
        jnp.dot(lhs2, w2t_ref[...], preferred_element_type=f32) + b2_ref[...],
        0.0)

    # ---- 2x2 max-pool #2 (x via halves, y via neighbouring row groups).
    #      Dropout2d is identity in eval mode.
    px = jnp.maximum(a2[:, :128], a2[:, 128:])        # (8*NP,128) lanes xp*32+co
    pxr = px.reshape(4, 2, NP, 128)
    py = jnp.maximum(pxr[:, 0], pxr[:, 1]).reshape(4 * NP, 128)   # rows (yp, n)

    # ---- BatchNorm2d #2 (eval).
    p2 = py * s2_ref[...] + t2_ref[...]

    # ---- fc0 over the 512 flattened features: single (NP,512)x(512,128) matmul.
    lhs0 = jnp.concatenate([p2[y * NP:(y + 1) * NP] for y in range(4)], axis=1)
    h0 = jnp.maximum(
        jnp.dot(lhs0, w0_ref[...], preferred_element_type=f32) + b0_ref[...],
        0.0)                                          # fc0 -> dropout(id) -> ReLU
    hb = h0 * sf_ref[...] + tf_ref[...]               # bnfc1 (eval affine)
    hh = jnp.maximum(
        jnp.dot(hb, wf1_ref[...], preferred_element_type=f32) + bf1_ref[...],
        0.0)                                          # fc1 -> ReLU; lanes >= 10 are 0
    h_ref[...] = hh                                   # dense (NP,128) store

    # ---- fc2 on concat(A,B): per-item [A | B] rows via aligned lane concat,
    #      one matmul over all NP rows; rows < bsz of the output are valid.
    hh_rot = jnp.concatenate([hh[bsz:], hh[:bsz]], axis=0)   # row b <- row (b+bsz) mod NP
    g = jnp.concatenate([hh, hh_rot], axis=1)                # (NP, 256)
    out_ref[...] = (jnp.dot(g, wcat_ref[...], preferred_element_type=f32)
                    + b2f_ref[...])                          # dense (NP,128) store


# --------------------------------- glue ------------------------------------

def _build_lhs1(x, NP):
    """x: (B,2,16,16) NCHW -> conv1 Toeplitz lhs of shape (16*NP, 128).

    rows ordered (yo%2, yo//2, n); K = ky*20 + xq (100 cols), col 100 = 1.0
    (bias), cols 101..127 = 0.
    """
    B = x.shape[0]
    NB = 2 * B
    xs = jnp.concatenate([x[:, 0], x[:, 1]], axis=0)            # A samples then B samples
    xs = jnp.pad(xs, ((0, NP - NB), (0, 0), (0, 0)))            # pad samples to NP
    xp = jnp.pad(xs, ((0, 0), (2, 2), (2, 2)))                  # (NP, 20, 20)
    yo_order = list(range(0, 16, 2)) + list(range(1, 16, 2))    # group rows by yo parity
    rows = jnp.stack([xp[:, yo:yo + 5, :] for yo in yo_order], axis=0)   # (16,NP,5,20)
    lhs1 = rows.reshape(16, NP, 100)
    lhs1 = jnp.concatenate(
        [lhs1,
         jnp.ones((16, NP, 1), jnp.float32),                    # bias column (K index 100)
         jnp.zeros((16, NP, 27), jnp.float32)], axis=-1)
    return lhs1.reshape(16 * NP, 128)


def convnetws_forward(x, kp, is_aux_loss=False):
    B = x.shape[0]
    NB = 2 * B
    NP = ((NB + 7) // 8) * 8                                    # sublane-aligned sample count
    lhs1 = _build_lhs1(x, NP)

    flops = 2 * (16 * NP * 128 * 256      # conv1 (Toeplitz)
                 + 8 * NP * 512 * 256     # conv2 (Toeplitz)
                 + NP * 512 * 128         # fc0
                 + NP * 128 * 128         # fc1
                 + NP * 256 * 128)        # fc2
    bytes_accessed = 4 * (int(lhs1.size)
                          + sum(int(v.size) for v in kp.values())
                          + 2 * NP * 128)

    vmem = pl.BlockSpec(memory_space=pltpu.MemorySpace.VMEM)
    out_p, h = pl.pallas_call(
        functools.partial(_fused_kernel, B),
        out_shape=(jax.ShapeDtypeStruct((NP, 128), jnp.float32),
                   jax.ShapeDtypeStruct((NP, 128), jnp.float32)),
        in_specs=[vmem] * 16,
        out_specs=(vmem, vmem),
        cost_estimate=pl.CostEstimate(flops=flops, transcendentals=0,
                                      bytes_accessed=bytes_accessed),
    )(lhs1, kp["w1t"], kp["s1t"], kp["t1t"],
      kp["w2t"], kp["b2t"], kp["s2t"], kp["t2t"],
      kp["w0t"], kp["b0t"], kp["sft"], kp["tft"],
      kp["wf1"], kp["bf1t"], kp["wcat"], kp["b2ft"])

    out = out_p[0:B, 0:2]
    if not is_aux_loss:
        return out
    return out, (h[0:B, :10], h[B:2 * B, :10])


# ------------------------------ parameters ---------------------------------

def bn_eval_scale_shift(gamma, beta, mean, var):
    scale = gamma / jnp.sqrt(var + EPS)
    shift = beta - mean * scale
    return scale, shift


def init_params(key):
    """PyTorch-layout parameters with PyTorch-default-style init."""
    ks = jax.random.split(key, 10)

    def u(k, shape, fan_in):
        bound = 1.0 / jnp.sqrt(jnp.float32(fan_in))
        return jax.random.uniform(k, shape, jnp.float32, -bound, bound)

    p = {}
    p["conv1_w"] = u(ks[0], (16, 1, 5, 5), 25)
    p["conv1_b"] = u(ks[1], (16,), 25)
    p["conv2_w"] = u(ks[2], (32, 16, 4, 4), 256)
    p["conv2_b"] = u(ks[3], (32,), 256)
    p["fc0_w"] = u(ks[4], (512, 100), 512)      # (in, out); in index = PyTorch flatten (c,y,x)
    p["fc0_b"] = u(ks[5], (100,), 512)
    p["fc1_w"] = u(ks[6], (100, 10), 100)
    p["fc1_b"] = u(ks[7], (10,), 100)
    p["fc2_w"] = u(ks[8], (20, 2), 20)
    p["fc2_b"] = u(ks[9], (2,), 20)
    # BatchNorm at fresh init (eval): gamma=1, beta=0, running_mean=0, running_var=1.
    p["bn1"] = (jnp.ones(16), jnp.zeros(16), jnp.zeros(16), jnp.ones(16))
    p["bn2"] = (jnp.ones(32), jnp.zeros(32), jnp.zeros(32), jnp.ones(32))
    p["bnfc1"] = (jnp.ones(100), jnp.zeros(100), jnp.zeros(100), jnp.ones(100))
    return p


def prepare_kernel_params(p):
    """One-time conversion to kernel-ready, lane-dense Toeplitz layouts."""
    kp = {}
    f32 = jnp.float32

    # ---- conv1 Toeplitz weight W1T (128 K, 256 N).
    #      K row = ky*20 + xq (xq = padded input x), row 100 = bias.
    #      N col = (xo%2)*128 + (xo//2)*16 + cout
    w1 = jnp.transpose(p["conv1_w"][:, 0, :, :], (1, 2, 0))       # (ky, kx, cout)
    ky = jnp.arange(5)[:, None, None, None]
    xq = jnp.arange(20)[None, :, None, None]
    xo = jnp.arange(16)[None, None, :, None]
    cc = jnp.arange(16)[None, None, None, :]
    kx = xq - xo
    ok = (kx >= 0) & (kx <= 4)
    vals = jnp.where(ok, w1[ky, jnp.clip(kx, 0, 4), cc], 0.0)     # (5,20,16,16) [ky,xq,xo,c]
    vals = jnp.transpose(vals.reshape(5, 20, 8, 2, 16),
                         (0, 1, 3, 2, 4)).reshape(100, 256)
    w1t = jnp.zeros((128, 256), f32).at[:100].set(vals)
    w1t = w1t.at[100].set(jnp.tile(p["conv1_b"], 16))
    kp["w1t"] = w1t

    s1, t1 = bn_eval_scale_shift(*p["bn1"])
    kp["s1t"] = jnp.tile(s1, 8).reshape(1, 128)
    kp["t1t"] = jnp.tile(t1, 8).reshape(1, 128)

    # ---- conv2 Toeplitz weight W2T (512 K, 256 N).
    #      K row = dy*128 + xh*16 + ci ;  N col = (x2%2)*128 + (x2//2)*32 + co
    w2 = jnp.transpose(p["conv2_w"], (2, 1, 3, 0))                # (dy, ci, dx, co)
    dy = jnp.arange(4)[:, None, None, None, None]
    xh = jnp.arange(8)[None, :, None, None, None]
    ci = jnp.arange(16)[None, None, :, None, None]
    x2 = jnp.arange(8)[None, None, None, :, None]
    co = jnp.arange(32)[None, None, None, None, :]
    dx = xh - x2 + 2
    ok2 = (dx >= 0) & (dx <= 3)
    vals2 = jnp.where(ok2, w2[dy, ci, jnp.clip(dx, 0, 3), co], 0.0)   # (4,8,16,8,32)
    vals2 = jnp.transpose(vals2.reshape(4, 8, 16, 4, 2, 32),
                          (0, 1, 2, 4, 3, 5))
    kp["w2t"] = vals2.reshape(512, 256)
    kp["b2t"] = jnp.tile(p["conv2_b"], 8).reshape(1, 256)

    s2, t2 = bn_eval_scale_shift(*p["bn2"])
    kp["s2t"] = jnp.tile(s2, 4).reshape(1, 128)
    kp["t2t"] = jnp.tile(t2, 4).reshape(1, 128)

    # ---- fc0: reorder rows from PyTorch flatten (c,y,x) to kernel order (y,x,c).
    yg, xg, cg = jnp.meshgrid(jnp.arange(4), jnp.arange(4), jnp.arange(32),
                              indexing="ij")
    feat = (cg * 16 + yg * 4 + xg).reshape(-1)                    # (512,)
    kp["w0t"] = jnp.pad(p["fc0_w"][feat], ((0, 0), (0, 28)))      # (512, 128)
    kp["b0t"] = jnp.pad(p["fc0_b"], (0, 28)).reshape(1, 128)

    sf, tf = bn_eval_scale_shift(*p["bnfc1"])
    kp["sft"] = jnp.concatenate([sf, jnp.ones(28, f32)]).reshape(1, 128)
    kp["tft"] = jnp.concatenate([tf, jnp.zeros(28, f32)]).reshape(1, 128)

    kp["wf1"] = jnp.pad(p["fc1_w"], ((0, 28), (0, 118)))          # (128, 128)
    kp["bf1t"] = jnp.pad(p["fc1_b"], (0, 118)).reshape(1, 128)

    # ---- fc2 on cat(A,B): rows 0..9 act on A lanes, rows 128..137 on B lanes.
    wcat = jnp.zeros((256, 128), f32)
    wcat = wcat.at[0:10, 0:2].set(p["fc2_w"][0:10])
    wcat = wcat.at[128:138, 0:2].set(p["fc2_w"][10:20])
    kp["wcat"] = wcat
    kp["b2ft"] = jnp.pad(p["fc2_b"], (0, 126)).reshape(1, 128)
    return kp


if __name__ == "__main__":
    key = jax.random.PRNGKey(0)
    kx, kparam = jax.random.split(key)
    # Input: NCHW, 2 channels, 16x16 spatial (implied by fc0 in-features = 32*4*4).
    x = jax.random.normal(kx, (2, 2, 16, 16), jnp.float32)
    params = init_params(kparam)
    kparams = prepare_kernel_params(params)     # one-time, kernel-ready layouts

    fwd = jax.jit(functools.partial(convnetws_forward, kp=kparams))
    out = fwd(x)
    jax.block_until_ready(out)
    assert out.shape == (2, 2) and out.dtype == jnp.float32
    print("KERNEL_OK")
</pallas_src>

<mosaic_0001>
module attributes {stable_mosaic.version = 11 : i64} {
  func.func @_fused_kernel(%arg0: memref<128x128xf32, #tpu.memory_space<vmem>>, %arg1: memref<128x256xf32, #tpu.memory_space<vmem>>, %arg2: memref<1x128xf32, #tpu.memory_space<vmem>>, %arg3: memref<1x128xf32, #tpu.memory_space<vmem>>, %arg4: memref<512x256xf32, #tpu.memory_space<vmem>>, %arg5: memref<1x256xf32, #tpu.memory_space<vmem>>, %arg6: memref<1x128xf32, #tpu.memory_space<vmem>>, %arg7: memref<1x128xf32, #tpu.memory_space<vmem>>, %arg8: memref<512x128xf32, #tpu.memory_space<vmem>>, %arg9: memref<1x128xf32, #tpu.memory_space<vmem>>, %arg10: memref<1x128xf32, #tpu.memory_space<vmem>>, %arg11: memref<1x128xf32, #tpu.memory_space<vmem>>, %arg12: memref<128x128xf32, #tpu.memory_space<vmem>>, %arg13: memref<1x128xf32, #tpu.memory_space<vmem>>, %arg14: memref<256x128xf32, #tpu.memory_space<vmem>>, %arg15: memref<1x128xf32, #tpu.memory_space<vmem>>, %arg16: memref<8x128xf32, #tpu.memory_space<vmem>>, %arg17: memref<8x128xf32, #tpu.memory_space<vmem>>) attributes {dimension_semantics = [], scalar_prefetch = 0 : i64, scratch_operands = 0 : i64, tpu.core_type = #tpu.core_type<tc>} {
    %c0 = arith.constant 0 : index
    %c0_0 = arith.constant 0 : index
    %0 = vector.load %arg0[%c0, %c0_0] : memref<128x128xf32, #tpu.memory_space<vmem>>, vector<128x128xf32>
    %c0_1 = arith.constant 0 : index
    %c0_2 = arith.constant 0 : index
    %1 = vector.load %arg1[%c0_1, %c0_2] : memref<128x256xf32, #tpu.memory_space<vmem>>, vector<128x256xf32>
    %cst = arith.constant dense<0.000000e+00> : vector<128x256xf32>
    %2 = tpu.matmul %0, %1, %cst {dimension_numbers = #tpu.dot_dimension_numbers<[1], [0], [0], [1], [0, 0, 1, 1], [], []>} : vector<128x128xf32>, vector<128x256xf32>, vector<128x256xf32> -> vector<128x256xf32>
    %cst_3 = arith.constant 0.000000e+00 : f32
    %3 = vector.broadcast %cst_3 : f32 to vector<128x256xf32>
    %4 = arith.maximumf %2, %3 : vector<128x256xf32>
    %5 = vector.extract_strided_slice %4 {offsets = [0, 0], sizes = [64, 256], strides = [1, 1]} : vector<128x256xf32> to vector<64x256xf32>
    %6 = vector.extract_strided_slice %4 {offsets = [64, 0], sizes = [64, 256], strides = [1, 1]} : vector<128x256xf32> to vector<64x256xf32>
    %7 = arith.maximumf %5, %6 : vector<64x256xf32>
    %8 = vector.extract_strided_slice %7 {offsets = [0, 0], sizes = [64, 128], strides = [1, 1]} : vector<64x256xf32> to vector<64x128xf32>
    %9 = vector.extract_strided_slice %7 {offsets = [0, 128], sizes = [64, 128], strides = [1, 1]} : vector<64x256xf32> to vector<64x128xf32>
    %10 = arith.maximumf %8, %9 : vector<64x128xf32>
    %c0_4 = arith.constant 0 : index
    %c0_5 = arith.constant 0 : index
    %11 = vector.load %arg2[%c0_4, %c0_5] : memref<1x128xf32, #tpu.memory_space<vmem>>, vector<1x128xf32>
    %12 = vector.broadcast %11 : vector<1x128xf32> to vector<64x128xf32>
    %13 = arith.mulf %10, %12 : vector<64x128xf32>
    %c0_6 = arith.constant 0 : index
    %c0_7 = arith.constant 0 : index
    %14 = vector.load %arg3[%c0_6, %c0_7] : memref<1x128xf32, #tpu.memory_space<vmem>>, vector<1x128xf32>
    %15 = vector.broadcast %14 : vector<1x128xf32> to vector<64x128xf32>
    %16 = arith.addf %13, %15 : vector<64x128xf32>
    %cst_8 = arith.constant 0.000000e+00 : f32
    %17 = vector.broadcast %cst_8 : f32 to vector<16x128xf32>
    %18 = tpu.concatenate %17, %16, %17 in 0 : vector<16x128xf32>, vector<64x128xf32>, vector<16x128xf32> -> vector<96x128xf32>
    %19 = vector.extract_strided_slice %18 {offsets = [0, 0], sizes = [64, 128], strides = [1, 1]} : vector<96x128xf32> to vector<64x128xf32>
    %20 = vector.extract_strided_slice %18 {offsets = [8, 0], sizes = [64, 128], strides = [1, 1]} : vector<96x128xf32> to vector<64x128xf32>
    %21 = vector.extract_strided_slice %18 {offsets = [16, 0], sizes = [64, 128], strides = [1, 1]} : vector<96x128xf32> to vector<64x128xf32>
    %22 = vector.extract_strided_slice %18 {offsets = [24, 0], sizes = [64, 128], strides = [1, 1]} : vector<96x128xf32> to vector<64x128xf32>
    %23 = tpu.concatenate %19, %20, %21, %22 in 1 : vector<64x128xf32>, vector<64x128xf32>, vector<64x128xf32>, vector<64x128xf32> -> vector<64x512xf32>
    %c0_9 = arith.constant 0 : index
    %c0_10 = arith.constant 0 : index
    %24 = vector.load %arg4[%c0_9, %c0_10] : memref<512x256xf32, #tpu.memory_space<vmem>>, vector<512x256xf32>
    %cst_11 = arith.constant dense<0.000000e+00> : vector<64x256xf32>
    %25 = tpu.matmul %23, %24, %cst_11 {dimension_numbers = #tpu.dot_dimension_numbers<[1], [0], [0], [1], [0, 0, 1, 1], [], []>} : vector<64x512xf32>, vector<512x256xf32>, vector<64x256xf32> -> vector<64x256xf32>
    %c0_12 = arith.constant 0 : index
    %c0_13 = arith.constant 0 : index
    %26 = vector.load %arg5[%c0_12, %c0_13] : memref<1x256xf32, #tpu.memory_space<vmem>>, vector<1x256xf32>
    %27 = vector.broadcast %26 : vector<1x256xf32> to vector<64x256xf32>
    %28 = arith.addf %25, %27 : vector<64x256xf32>
    %cst_14 = arith.constant 0.000000e+00 : f32
    %29 = vector.broadcast %cst_14 : f32 to vector<64x256xf32>
    %30 = arith.maximumf %28, %29 : vector<64x256xf32>
    %31 = vector.extract_strided_slice %30 {offsets = [0, 0], sizes = [64, 128], strides = [1, 1]} : vector<64x256xf32> to vector<64x128xf32>
    %32 = vector.extract_strided_slice %30 {offsets = [0, 128], sizes = [64, 128], strides = [1, 1]} : vector<64x256xf32> to vector<64x128xf32>
    %33 = arith.maximumf %31, %32 : vector<64x128xf32>
    %34 = vector.shape_cast %33 : vector<64x128xf32> to vector<4x2x8x128xf32>
    %35 = vector.extract_strided_slice %34 {offsets = [0, 0, 0, 0], sizes = [4, 1, 8, 128], strides = [1, 1, 1, 1]} : vector<4x2x8x128xf32> to vector<4x1x8x128xf32>
    %36 = vector.shape_cast %35 : vector<4x1x8x128xf32> to vector<4x8x128xf32>
    %37 = vector.extract_strided_slice %34 {offsets = [0, 1, 0, 0], sizes = [4, 1, 8, 128], strides = [1, 1, 1, 1]} : vector<4x2x8x128xf32> to vector<4x1x8x128xf32>
    %38 = vector.shape_cast %37 : vector<4x1x8x128xf32> to vector<4x8x128xf32>
    %39 = arith.maximumf %36, %38 : vector<4x8x128xf32>
    %40 = vector.shape_cast %39 : vector<4x8x128xf32> to vector<32x128xf32>
    %c0_15 = arith.constant 0 : index
    %c0_16 = arith.constant 0 : index
    %41 = vector.load %arg6[%c0_15, %c0_16] : memref<1x128xf32, #tpu.memory_space<vmem>>, vector<1x128xf32>
    %42 = vector.broadcast %41 : vector<1x128xf32> to vector<32x128xf32>
    %43 = arith.mulf %40, %42 : vector<32x128xf32>
    %c0_17 = arith.constant 0 : index
    %c0_18 = arith.constant 0 : index
    %44 = vector.load %arg7[%c0_17, %c0_18] : memref<1x128xf32, #tpu.memory_space<vmem>>, vector<1x128xf32>
    %45 = vector.broadcast %44 : vector<1x128xf32> to vector<32x128xf32>
    %46 = arith.addf %43, %45 : vector<32x128xf32>
    %47 = vector.extract_strided_slice %46 {offsets = [0, 0], sizes = [8, 128], strides = [1, 1]} : vector<32x128xf32> to vector<8x128xf32>
    %48 = vector.extract_strided_slice %46 {offsets = [8, 0], sizes = [8, 128], strides = [1, 1]} : vector<32x128xf32> to vector<8x128xf32>
    %49 = vector.extract_strided_slice %46 {offsets = [16, 0], sizes = [8, 128], strides = [1, 1]} : vector<32x128xf32> to vector<8x128xf32>
    %50 = vector.extract_strided_slice %46 {offsets = [24, 0], sizes = [8, 128], strides = [1, 1]} : vector<32x128xf32> to vector<8x128xf32>
    %51 = tpu.concatenate %47, %48, %49, %50 in 1 : vector<8x128xf32>, vector<8x128xf32>, vector<8x128xf32>, vector<8x128xf32> -> vector<8x512xf32>
    %c0_19 = arith.constant 0 : index
    %c0_20 = arith.constant 0 : index
    %52 = vector.load %arg8[%c0_19, %c0_20] : memref<512x128xf32, #tpu.memory_space<vmem>>, vector<512x128xf32>
    %cst_21 = arith.constant dense<0.000000e+00> : vector<8x128xf32>
    %53 = tpu.matmul %51, %52, %cst_21 {dimension_numbers = #tpu.dot_dimension_numbers<[1], [0], [0], [1], [0, 0, 1, 1], [], []>} : vector<8x512xf32>, vector<512x128xf32>, vector<8x128xf32> -> vector<8x128xf32>
    %c0_22 = arith.constant 0 : index
    %c0_23 = arith.constant 0 : index
    %54 = vector.load %arg9[%c0_22, %c0_23] : memref<1x128xf32, #tpu.memory_space<vmem>>, vector<1x128xf32>
    %55 = vector.broadcast %54 : vector<1x128xf32> to vector<8x128xf32>
    %56 = arith.addf %53, %55 : vector<8x128xf32>
    %cst_24 = arith.constant 0.000000e+00 : f32
    %57 = vector.broadcast %cst_24 : f32 to vector<8x128xf32>
    %58 = arith.maximumf %56, %57 : vector<8x128xf32>
    %c0_25 = arith.constant 0 : index
    %c0_26 = arith.constant 0 : index
    %59 = vector.load %arg10[%c0_25, %c0_26] : memref<1x128xf32, #tpu.memory_space<vmem>>, vector<1x128xf32>
    %60 = vector.broadcast %59 : vector<1x128xf32> to vector<8x128xf32>
    %61 = arith.mulf %58, %60 : vector<8x128xf32>
    %c0_27 = arith.constant 0 : index
    %c0_28 = arith.constant 0 : index
    %62 = vector.load %arg11[%c0_27, %c0_28] : memref<1x128xf32, #tpu.memory_space<vmem>>, vector<1x128xf32>
    %63 = vector.broadcast %62 : vector<1x128xf32> to vector<8x128xf32>
    %64 = arith.addf %61, %63 : vector<8x128xf32>
    %c0_29 = arith.constant 0 : index
    %c0_30 = arith.constant 0 : index
    %65 = vector.load %arg12[%c0_29, %c0_30] : memref<128x128xf32, #tpu.memory_space<vmem>>, vector<128x128xf32>
    %cst_31 = arith.constant dense<0.000000e+00> : vector<8x128xf32>
    %66 = tpu.matmul %64, %65, %cst_31 {dimension_numbers = #tpu.dot_dimension_numbers<[1], [0], [0], [1], [0, 0, 1, 1], [], []>} : vector<8x128xf32>, vector<128x128xf32>, vector<8x128xf32> -> vector<8x128xf32>
    %c0_32 = arith.constant 0 : index
    %c0_33 = arith.constant 0 : index
    %67 = vector.load %arg13[%c0_32, %c0_33] : memref<1x128xf32, #tpu.memory_space<vmem>>, vector<1x128xf32>
    %68 = vector.broadcast %67 : vector<1x128xf32> to vector<8x128xf32>
    %69 = arith.addf %66, %68 : vector<8x128xf32>
    %cst_34 = arith.constant 0.000000e+00 : f32
    %70 = vector.broadcast %cst_34 : f32 to vector<8x128xf32>
    %71 = arith.maximumf %69, %70 : vector<8x128xf32>
    %c0_35 = arith.constant 0 : index
    %c0_36 = arith.constant 0 : index
    %72 = vector.load %arg17[%c0_35, %c0_36] : memref<8x128xf32, #tpu.memory_space<vmem>>, vector<8x128xf32>
    tpu.vector_store %arg17[%c0_35, %c0_36], %71 {strides = array<i32>} : memref<8x128xf32, #tpu.memory_space<vmem>>, vector<8x128xf32>,
    %73 = vector.extract_strided_slice %71 {offsets = [2, 0], sizes = [6, 128], strides = [1, 1]} : vector<8x128xf32> to vector<6x128xf32>
    %74 = vector.extract_strided_slice %71 {offsets = [0, 0], sizes = [2, 128], strides = [1, 1]} : vector<8x128xf32> to vector<2x128xf32>
    %75 = tpu.concatenate %73, %74 in 0 : vector<6x128xf32>, vector<2x128xf32> -> vector<8x128xf32>
    %76 = tpu.concatenate %71, %75 in 1 : vector<8x128xf32>, vector<8x128xf32> -> vector<8x256xf32>
    %c0_37 = arith.constant 0 : index
    %c0_38 = arith.constant 0 : index
    %77 = vector.load %arg14[%c0_37, %c0_38] : memref<256x128xf32, #tpu.memory_space<vmem>>, vector<256x128xf32>
    %cst_39 = arith.constant dense<0.000000e+00> : vector<8x128xf32>
    %78 = tpu.matmul %76, %77, %cst_39 {dimension_numbers = #tpu.dot_dimension_numbers<[1], [0], [0], [1], [0, 0, 1, 1], [], []>} : vector<8x256xf32>, vector<256x128xf32>, vector<8x128xf32> -> vector<8x128xf32>
    %c0_40 = arith.constant 0 : index
    %c0_41 = arith.constant 0 : index
    %79 = vector.load %arg15[%c0_40, %c0_41] : memref<1x128xf32, #tpu.memory_space<vmem>>, vector<1x128xf32>
    %80 = vector.broadcast %79 : vector<1x128xf32> to vector<8x128xf32>
    %81 = arith.addf %78, %80 : vector<8x128xf32>
    %c0_42 = arith.constant 0 : index
    %c0_43 = arith.constant 0 : index
    %82 = vector.load %arg16[%c0_42, %c0_43] : memref<8x128xf32, #tpu.memory_space<vmem>>, vector<8x128xf32>
    tpu.vector_store %arg16[%c0_42, %c0_43], %81 {strides = array<i32>} : memref<8x128xf32, #tpu.memory_space<vmem>>, vector<8x128xf32>,
    return
  }
}

</mosaic_0001>

<bundles_post_ra>
// kernel: convnetws_forward.1
= control target key start
LH: loop header
LB: loop body
LE: loop exit
PB: predicated region body
PF: predicated region fallthrough
CT: control target
= control target key end

     0   :  { %s2846_s0 = inlined_call_operand.vmem [shape: f32[128,128], index: 0, kind: input, shape index: {}]   ;;  %s2847_s1 = inlined_call_operand.vmem [shape: f32[128,256], index: 1, kind: input, shape index: {}]   ;;  %s2848_s2 = inlined_call_operand.vmem [shape: f32[1,128], index: 2, kind: input, shape index: {}, may-alias: {2,6}]   ;;  %s2849_s3 = inlined_call_operand.vmem [shape: f32[1,128], index: 3, kind: input, shape index: {}, may-alias: {3,7,11}]   ;;  %s2850_s4 = inlined_call_operand.vmem [shape: f32[512,256], index: 4, kind: input, shape index: {}]   ;;  %s2851_s5 = inlined_call_operand.vmem [shape: f32[1,256], index: 5, kind: input, shape index: {}]   ;;  %s2852_s6 = inlined_call_operand.vmem [shape: f32[1,128], index: 6, kind: input, shape index: {}, may-alias: {2,6}]   ;;  %s2853_s7 = inlined_call_operand.vmem [shape: f32[1,128], index: 7, kind: input, shape index: {}, may-alias: {3,7,11}]   ;;  %s2854_s8 = inlined_call_operand.vmem [shape: f32[512,128], index: 8, kind: input, shape index: {}]   ;;  %s2855_s9 = inlined_call_operand.vmem [shape: f32[1,128], index: 9, kind: input, shape index: {}]   ;;  %s2856_s10 = inlined_call_operand.vmem [shape: f32[1,128], index: 10, kind: input, shape index: {}]   ;;  %s2857_s11 = inlined_call_operand.vmem [shape: f32[1,128], index: 11, kind: input, shape index: {}, may-alias: {3,7,11}]   ;;  %s2858_s12 = inlined_call_operand.vmem [shape: f32[128,128], index: 12, kind: input, shape index: {}]   ;;  %s2859_s13 = inlined_call_operand.vmem [shape: f32[1,128], index: 13, kind: input, shape index: {}]   ;;  %s2860_s14 = inlined_call_operand.vmem [shape: f32[256,128], index: 14, kind: input, shape index: {}]   ;;  %s2861_s15 = inlined_call_operand.vmem [shape: f32[1,128], index: 15, kind: input, shape index: {}]   ;;  %s2862_s16 = inlined_call_operand.vmem [shape: f32[8,128], index: 16, kind: output, shape index: {0}]   ;;  %s2863_s17 = inlined_call_operand.hbm [shape: f32[8,128], index: 17, kind: output, shape index: {1}]  }
   0x1   :  { %2866 = sst [smem:[#allocation5_spill]] %s2846_s0 }
   0x2   :  { %2867 = sst [smem:[#allocation6_spill]] %s2847_s1 }
   0x3   :  { %s2868_s26 = sld [smem:[#allocation6_spill]]  ;;  %v1729_v7 = vmov 0.0   ;;  %v352_v37 = vld [vmem:[%s2850_s4 + $0x8] sm:$0xff]  ;;  %v354_v38 = vld [vmem:[%s2850_s4 + $0x18] sm:$0xff]  ;;  %v351_v39 = vld [vmem:[%s2850_s4] sm:$0xff]  ;;  %s2869_s21 = sld [smem:[#allocation5_spill]] }
   0x4   :  { %168 = vmatprep.mubr.f32.mxu0 %v1729_v7  ;;  %555 = vmatprep.mubr.f32.mxu1 %v1729_v7  ;;  %v1421_v41 = vpack.c.bf16 %v354_v38, %v352_v37  ;;  %v353_v42 = vld [vmem:[%s2850_s4 + $0x10] sm:$0xff]  ;;  %v356_v43 = vld [vmem:[%s2850_s4 + $0x28] sm:$0xff]  ;;  %v358_v44 = vld [vmem:[%s2850_s4 + $0x38] sm:$0xff] }
   0x5   :  { %v1423_v45 = vpack.c.bf16 %v353_v42, %v351_v39  ;;  %v1425_v46 = vpack.c.bf16 %v358_v44, %v356_v43  ;;  %v355_v47 = vld [vmem:[%s2850_s4 + $0x20] sm:$0xff]  ;;  %v357_v48 = vld [vmem:[%s2850_s4 + $0x30] sm:$0xff]  ;;  %v360_v49 = vld [vmem:[%s2850_s4 + $0x48] sm:$0xff] }
   0x6   :  { %1422 = vmatprep.subr.bf16.mxu1 %v1421_v41  ;;  %v362_v50 = vld [vmem:[%s2850_s4 + $0x58] sm:$0xff]  ;;  %v1427_v54 = vpack.c.bf16 %v357_v48, %v355_v47  ;;  %v359_v58 = vld [vmem:[%s2850_s4 + $0x40] sm:$0xff]  ;;  %v361_v59 = vld [vmem:[%s2850_s4 + $0x50] sm:$0xff] }
   0x7   :  { %1424 = vmatpush1.bf16.msra.mxu1 %v1423_v45  ;;  %v1429_v57 = vpack.c.bf16 %v362_v50, %v360_v49  ;;  %v364_v61 = vld [vmem:[%s2850_s4 + $0x68] sm:$0xff]  ;;  %v366_v62 = vld [vmem:[%s2850_s4 + $0x78] sm:$0xff] }
   0x8   :  { %1426 = vmatprep.subr.bf16.mxu1 %v1425_v46 }
   0x9   :  { %v73_v0 = vld [vmem:[%s2868_s26 + $0x8] sm:$0xff]  ;;  %v75_v1 = vld [vmem:[%s2868_s26 + $0x18] sm:$0xff]  ;;  %v72_v2 = vld [vmem:[%s2868_s26] sm:$0xff] }
   0xa   :  { %v1389_v3 = vpack.c.bf16 %v75_v1, %v73_v0  ;;  %v74_v4 = vld [vmem:[%s2868_s26 + $0x10] sm:$0xff]  ;;  %v77_v5 = vld [vmem:[%s2868_s26 + $0x28] sm:$0xff]  ;;  %v79_v6 = vld [vmem:[%s2868_s26 + $0x38] sm:$0xff]  ;;  %v1431_v1 = vpack.c.bf16 %v361_v59, %v359_v58 }
   0xb   :  { %v1391_v8 = vpack.c.bf16 %v74_v4, %v72_v2  ;;  %v1393_v9 = vpack.c.bf16 %v79_v6, %v77_v5  ;;  %v76_v10 = vld [vmem:[%s2868_s26 + $0x20] sm:$0xff]  ;;  %v78_v11 = vld [vmem:[%s2868_s26 + $0x30] sm:$0xff]  ;;  %v81_v12 = vld [vmem:[%s2868_s26 + $0x48] sm:$0xff]  ;;  %1428 = vmatpush1.bf16.msra.mxu1 %v1427_v54  ;;  %v1433_v4 = vpack.c.bf16 %v366_v62, %v364_v61 }
   0xc   :  { %1390 = vmatprep.subr.bf16.mxu0 %v1389_v3  ;;  %v83_v13 = vld [vmem:[%s2868_s26 + $0x58] sm:$0xff]  ;;  %v1395_v14 = vpack.c.bf16 %v78_v11, %v76_v10  ;;  %v80_v16 = vld [vmem:[%s2868_s26 + $0x40] sm:$0xff]  ;;  %v82_v17 = vld [vmem:[%s2868_s26 + $0x50] sm:$0xff]  ;;  %1430 = vmatprep.subr.bf16.mxu1 %v1429_v57 }
   0xd   :  { %1392 = vmatpush1.bf16.msra.mxu0 %v1391_v8  ;;  %v1397_v15 = vpack.c.bf16 %v83_v13, %v81_v12  ;;  %v85_v18 = vld [vmem:[%s2868_s26 + $0x68] sm:$0xff]  ;;  %v87_v19 = vld [vmem:[%s2868_s26 + $0x78] sm:$0xff]  ;;  %v1399_v20 = vpack.c.bf16 %v82_v17, %v80_v16  ;;  %v84_v22 = vld [vmem:[%s2868_s26 + $0x60] sm:$0xff] }
   0xe   :  { %1394 = vmatprep.subr.bf16.mxu0 %v1393_v9  ;;  %v1401_v21 = vpack.c.bf16 %v87_v19, %v85_v18  ;;  %v86_v23 = vld [vmem:[%s2868_s26 + $0x70] sm:$0xff]  ;;  %v89_v24 = vld [vmem:[%s2868_s26 + $0x88] sm:$0xff]  ;;  %v91_v25 = vld [vmem:[%s2868_s26 + $0x98] sm:$0xff] }
   0xf   :  { %v1403_v26 = vpack.c.bf16 %v86_v23, %v84_v22  ;;  %v1405_v27 = vpack.c.bf16 %v91_v25, %v89_v24  ;;  %v88_v28 = vld [vmem:[%s2868_s26 + $0x80] sm:$0xff]  ;;  %v90_v29 = vld [vmem:[%s2868_s26 + $0x90] sm:$0xff]  ;;  %v93_v30 = vld [vmem:[%s2868_s26 + $0xa8] sm:$0xff]  ;;  %1432 = vmatpush1.bf16.msra.mxu1 %v1431_v1 }
  0x10   :  { %v95_v31 = vld [vmem:[%s2868_s26 + $0xb8] sm:$0xff]  ;;  %v92_v32 = vld [vmem:[%s2868_s26 + $0xa0] sm:$0xff]  ;;  %v94_v33 = vld [vmem:[%s2868_s26 + $0xb0] sm:$0xff]  ;;  %v1407_v34 = vpack.c.bf16 %v90_v29, %v88_v28  ;;  %1434 = vmatprep.subr.bf16.mxu1 %v1433_v4 }
  0x11   :  { %1396 = vmatpush1.bf16.msra.mxu0 %v1395_v14  ;;  %v97_v35 = vld [vmem:[%s2868_s26 + $0xc8] sm:$0xff]  ;;  %v99_v36 = vld [vmem:[%s2868_s26 + $0xd8] sm:$0xff]  ;;  %v1409_v40 = vpack.c.bf16 %v95_v31, %v93_v30  ;;  %v1411_v51 = vpack.c.bf16 %v94_v33, %v92_v32  ;;  %v96_v52 = vld [vmem:[%s2868_s26 + $0xc0] sm:$0xff] }
  0x12   :  { %1398 = vmatprep.subr.bf16.mxu0 %v1397_v15  ;;  %v98_v53 = vld [vmem:[%s2868_s26 + $0xd0] sm:$0xff]  ;;  %v1413_v55 = vpack.c.bf16 %v99_v36, %v97_v35  ;;  %v101_v56 = vld [vmem:[%s2868_s26 + $0xe8] sm:$0xff]  ;;  %v103_v60 = vld [vmem:[%s2868_s26 + $0xf8] sm:$0xff] }
  0x13   :  { %v1415_v63 = vpack.c.bf16 %v98_v53, %v96_v52  ;;  %v100_v0 = vld [vmem:[%s2868_s26 + $0xe0] sm:$0xff]  ;;  %v1417_v2 = vpack.c.bf16 %v103_v60, %v101_v56  ;;  %v102_v3 = vld [vmem:[%s2868_s26 + $0xf0] sm:$0xff]  ;;  %v368_v8 = vld [vmem:[%s2850_s4 + $0x88] sm:$0xff] }
  0x14   :  { %v363_v5 = vld [vmem:[%s2850_s4 + $0x60] sm:$0xff]  ;;  %v365_v6 = vld [vmem:[%s2850_s4 + $0x70] sm:$0xff]  ;;  %v370_v9 = vld [vmem:[%s2850_s4 + $0x98] sm:$0xff]  ;;  %v1419_v10 = vpack.c.bf16 %v102_v3, %v100_v0 }
  0x15   :  { %1400 = vmatpush1.bf16.msra.mxu0 %v1399_v20  ;;  %v1435_v11 = vpack.c.bf16 %v365_v6, %v363_v5  ;;  %v1437_v12 = vpack.c.bf16 %v370_v9, %v368_v8  ;;  %v367_v13 = vld [vmem:[%s2850_s4 + $0x80] sm:$0xff]  ;;  %v369_v14 = vld [vmem:[%s2850_s4 + $0x90] sm:$0xff]  ;;  %v372_v15 = vld [vmem:[%s2850_s4 + $0xa8] sm:$0xff] }
  0x16   :  { %1402 = vmatprep.subr.bf16.mxu0 %v1401_v21  ;;  %v374_v16 = vld [vmem:[%s2850_s4 + $0xb8] sm:$0xff]  ;;  %v56_v17 = vld [vmem:[%s2869_s21] sm:$0xff]  ;;  %v1439_v18 = vpack.c.bf16 %v369_v14, %v367_v13  ;;  %v373_v21 = vld [vmem:[%s2850_s4 + $0xb0] sm:$0xff] }
  0x17   :  { %1436 = vmatpush1.bf16.msra.mxu1 %v1435_v11  ;;  %v1441_v19 = vpack.c.bf16 %v374_v16, %v372_v15  ;;  %v371_v20 = vld [vmem:[%s2850_s4 + $0xa0] sm:$0xff]  ;;  %v376_v22 = vld [vmem:[%s2850_s4 + $0xc8] sm:$0xff]  ;;  %v378_v23 = vld [vmem:[%s2850_s4 + $0xd8] sm:$0xff] }
  0x18   :  { %1438 = vmatprep.subr.bf16.mxu1 %v1437_v12 }
  0x19   :  { %1404 = vmatpush1.bf16.msra.mxu0 %v1403_v26 }
  0x1a   :  { %1406 = vmatprep.subr.bf16.mxu0 %v1405_v27 }
  0x1d   :  { %1408 = vmatpush1.bf16.msra.mxu0 %v1407_v34 }
  0x1e   :  { %1410 = vmatprep.subr.bf16.mxu0 %v1409_v40 }
  0x21   :  { %1412 = vmatpush1.bf16.msra.mxu0 %v1411_v51 }
  0x22   :  { %1414 = vmatprep.subr.bf16.mxu0 %v1413_v55 }
  0x25   :  { %1416 = vmatpush1.bf16.msra.mxu0 %v1415_v63 }
  0x26   :  { %1418 = vmatprep.subr.bf16.mxu0 %v1417_v2 }
  0x29   :  { %1420 = vmatpush1.bf16.msra.mxu0 %v1419_v10 }
  0x2a   :  { %23 = vsyncpa [#allocation3], 0  ;;  %v57_v24 = vld [vmem:[%s2869_s21 + $0x8] sm:$0xff]  ;;  %1440 = vmatpush1.bf16.msra.mxu1 %v1439_v18  ;;  %v1443_v25 = vpack.c.bf16 %v373_v21, %v371_v20  ;;  %v1445_v26 = vpack.c.bf16 %v378_v23, %v376_v22  ;;  %v375_v27 = vld [vmem:[%s2850_s4 + $0xc0] sm:$0xff]  ;;  %vm1731_vm0 = vmmov 0   ;;  %s1732_s27 = smov [#allocation2]  }
  0x2b   :  { %1442 = vmatprep.subr.bf16.mxu1 %v1441_v19  ;;  %v377_v28 = vld [vmem:[%s2850_s4 + $0xd0] sm:$0xff]  ;;  %v380_v29 = vld [vmem:[%s2850_s4 + $0xe8] sm:$0xff]  ;;  %v382_v30 = vld [vmem:[%s2850_s4 + $0xf8] sm:$0xff]  ;;  %s1213_s28 = sshll.u32 %s1732_s27, 4  ;;  %s1214_s28 = int_to_ptr.vmem [resolvable:$true] %s1213_s28 }
  0x2c   :  { %169 = vmatmul.mubr.f32.vlgmr.msra.gmra.mrb[0].mxu0 %v56_v17  ;;  %v58_v31 = vld [vmem:[%s2869_s21 + $0x10] sm:$0xff]  ;;  %v1447_v32 = vpack.c.bf16 %v377_v28, %v375_v27  ;;  %v1449_v33 = vpack.c.bf16 %v382_v30, %v380_v29  ;;  %v379_v34 = vld [vmem:[%s2850_s4 + $0xe0] sm:$0xff]  ;;  %v384_v36 = vld [vmem:[%s2850_s4 + $0x108] sm:$0xff]  ;;  %p1710_p1 = scmp.lt.s32.totalorder %s1214_s28, %s1214_s28 }
  0x2d   :  { %174 = vmatprep.mubr.f32.mxu0 %v1729_v7  ;;  %v381_v35 = vld [vmem:[%s2850_s4 + $0xf0] sm:$0xff]  ;;  %v386_v37 = vld [vmem:[%s2850_s4 + $0x118] sm:$0xff]  ;;  %v383_v41 = vld [vmem:[%s2850_s4 + $0x100] sm:$0xff] }
  0x2e   :  { %1444 = vmatpush1.bf16.msra.mxu1 %v1443_v25  ;;  %v59_v38 = vld [vmem:[%s2869_s21 + $0x18] sm:$0xff]  ;;  %v1451_v39 = vpack.c.bf16 %v381_v35, %v379_v34  ;;  %v1453_v40 = vpack.c.bf16 %v386_v37, %v384_v36  ;;  %v385_v42 = vld [vmem:[%s2850_s4 + $0x110] sm:$0xff]  ;;  %v388_v43 = vld [vmem:[%s2850_s4 + $0x128] sm:$0xff] }
  0x2f   :  { %1446 = vmatprep.subr.bf16.mxu1 %v1445_v26  ;;  %v390_v44 = vld [vmem:[%s2850_s4 + $0x138] sm:$0xff]  ;;  %v60_v45 = vld [vmem:[%s2869_s21 + $0x20] sm:$0xff]  ;;  %v1455_v46 = vpack.c.bf16 %v385_v42, %v383_v41  ;;  %v389_v49 = vld [vmem:[%s2850_s4 + $0x130] sm:$0xff] }
  0x30   :  { %175 = vmatmul.mubr.f32.gmra.mrb[2].mxu0 %v57_v24  ;;  %v1457_v47 = vpack.c.bf16 %v390_v44, %v388_v43  ;;  %v387_v48 = vld [vmem:[%s2850_s4 + $0x120] sm:$0xff]  ;;  %v392_v50 = vld [vmem:[%s2850_s4 + $0x148] sm:$0xff]  ;;  %v394_v51 = vld [vmem:[%s2850_s4 + $0x158] sm:$0xff] }
  0x31   :  { %180 = vmatprep.mubr.f32.mxu0 %v1729_v7  ;;  %v61_v52 = vld [vmem:[%s2869_s21 + $0x28] sm:$0xff]  ;;  %v1459_v53 = vpack.c.bf16 %v389_v49, %v387_v48  ;;  %v1461_v54 = vpack.c.bf16 %v394_v51, %v392_v50  ;;  %v391_v55 = vld [vmem:[%s2850_s4 + $0x140] sm:$0xff]  ;;  %v393_v56 = vld [vmem:[%s2850_s4 + $0x150] sm:$0xff] }
  0x32   :  { %1448 = vmatpush1.bf16.msra.mxu1 %v1447_v32  ;;  %v396_v57 = vld [vmem:[%s2850_s4 + $0x168] sm:$0xff]  ;;  %v398_v58 = vld [vmem:[%s2850_s4 + $0x178] sm:$0xff]  ;;  %v62_v59 = vld [vmem:[%s2869_s21 + $0x30] sm:$0xff]  ;;  %v1463_v60 = vpack.c.bf16 %v393_v56, %v391_v55 }
  0x33   :  { %1450 = vmatprep.subr.bf16.mxu1 %v1449_v33  ;;  %v1465_v61 = vpack.c.bf16 %v398_v58, %v396_v57  ;;  %v395_v62 = vld [vmem:[%s2850_s4 + $0x160] sm:$0xff]  ;;  %v397_v63 = vld [vmem:[%s2850_s4 + $0x170] sm:$0xff]  ;;  %v400_v0 = vld [vmem:[%s2850_s4 + $0x188] sm:$0xff] }
  0x34   :  { %181 = vmatmul.mubr.f32.gmra.mrb[4].mxu0 %v58_v31  ;;  %v402_v1 = vld [vmem:[%s2850_s4 + $0x198] sm:$0xff]  ;;  %v1467_v3 = vpack.c.bf16 %v397_v63, %v395_v62  ;;  %v399_v5 = vld [vmem:[%s2850_s4 + $0x180] sm:$0xff]  ;;  %v401_v6 = vld [vmem:[%s2850_s4 + $0x190] sm:$0xff] }
  0x35   :  { %186 = vmatprep.mubr.f32.mxu0 %v1729_v7  ;;  %v63_v2 = vld [vmem:[%s2869_s21 + $0x38] sm:$0xff]  ;;  %v1469_v4 = vpack.c.bf16 %v402_v1, %v400_v0  ;;  %v404_v8 = vld [vmem:[%s2850_s4 + $0x1a8] sm:$0xff]  ;;  %v64_v10 = vld [vmem:[%s2869_s21 + $0x40] sm:$0xff]  ;;  %v1471_v11 = vpack.c.bf16 %v401_v6, %v399_v5 }
  0x36   :  { %1452 = vmatpush1.bf16.msra.mxu1 %v1451_v39  ;;  %v406_v9 = vld [vmem:[%s2850_s4 + $0x1b8] sm:$0xff]  ;;  %v403_v13 = vld [vmem:[%s2850_s4 + $0x1a0] sm:$0xff]  ;;  %v405_v14 = vld [vmem:[%s2850_s4 + $0x1b0] sm:$0xff] }
  0x37   :  { %1454 = vmatprep.subr.bf16.mxu1 %v1453_v40  ;;  %v1473_v12 = vpack.c.bf16 %v406_v9, %v404_v8  ;;  %v65_v15 = vld [vmem:[%s2869_s21 + $0x48] sm:$0xff]  ;;  %v1475_v16 = vpack.c.bf16 %v405_v14, %v403_v13  ;;  %v66_v17 = vld [vmem:[%s2869_s21 + $0x50] sm:$0xff]  ;;  %v67_v18 = vld [vmem:[%s2869_s21 + $0x58] sm:$0xff] }
  0x38   :  { %187 = vmatmul.mubr.f32.gmra.mrb[6].mxu0 %v59_v38  ;;  %v68_v19 = vld [vmem:[%s2869_s21 + $0x60] sm:$0xff]  ;;  %v69_v20 = vld [vmem:[%s2869_s21 + $0x68] sm:$0xff]  ;;  %v70_v21 = vld [vmem:[%s2869_s21 + $0x70] sm:$0xff] }
  0x39   :  { %192 = vmatprep.mubr.f32.mxu0 %v1729_v7  ;;  %v71_v22 = vld [vmem:[%s2869_s21 + $0x78] sm:$0xff]  ;;  %v408_v23 = vld [vmem:[%s2850_s4 + $0x1c8] sm:$0xff]  ;;  %v407_v26 = vld [vmem:[%s2850_s4 + $0x1c0] sm:$0xff] }
  0x3a   :  { %1456 = vmatpush1.bf16.msra.mxu1 %v1455_v46  ;;  %v410_v24 = vld [vmem:[%s2850_s4 + $0x1d8] sm:$0xff]  ;;  %v409_v27 = vld [vmem:[%s2850_s4 + $0x1d0] sm:$0xff]  ;;  %v412_v29 = vld [vmem:[%s2850_s4 + $0x1e8] sm:$0xff] }
  0x3b   :  { %1458 = vmatprep.subr.bf16.mxu1 %v1457_v47  ;;  %v1477_v25 = vpack.c.bf16 %v410_v24, %v408_v23  ;;  %v1479_v28 = vpack.c.bf16 %v409_v27, %v407_v26  ;;  %v414_v30 = vld [vmem:[%s2850_s4 + $0x1f8] sm:$0xff]  ;;  %v411_v32 = vld [vmem:[%s2850_s4 + $0x1e0] sm:$0xff]  ;;  %v413_v33 = vld [vmem:[%s2850_s4 + $0x1f0] sm:$0xff] }
  0x3c   :  { %193 = vmatmul.mubr.f32.gmra.mrb[8].mxu0 %v60_v45  ;;  %v1481_v31 = vpack.c.bf16 %v414_v30, %v412_v29  ;;  %v1483_v34 = vpack.c.bf16 %v413_v33, %v411_v32  ;;  %v416_v35 = vld [vmem:[%s2850_s4 + $0x208] sm:$0xff]  ;;  %v418_v36 = vld [vmem:[%s2850_s4 + $0x218] sm:$0xff]  ;;  %v415_v38 = vld [vmem:[%s2850_s4 + $0x200] sm:$0xff] }
  0x3d   :  { %198 = vmatprep.mubr.f32.mxu0 %v1729_v7  ;;  %v1485_v37 = vpack.c.bf16 %v418_v36, %v416_v35  ;;  %v417_v39 = vld [vmem:[%s2850_s4 + $0x210] sm:$0xff]  ;;  %v420_v41 = vld [vmem:[%s2850_s4 + $0x228] sm:$0xff]  ;;  %v422_v42 = vld [vmem:[%s2850_s4 + $0x238] sm:$0xff] }
  0x3e   :  { %1460 = vmatpush1.bf16.msra.mxu1 %v1459_v53  ;;  %v1487_v40 = vpack.c.bf16 %v417_v39, %v415_v38  ;;  %v1489_v43 = vpack.c.bf16 %v422_v42, %v420_v41  ;;  %v419_v44 = vld [vmem:[%s2850_s4 + $0x220] sm:$0xff]  ;;  %v421_v45 = vld [vmem:[%s2850_s4 + $0x230] sm:$0xff]  ;;  %v424_v47 = vld [vmem:[%s2850_s4 + $0x248] sm:$0xff] }
  0x3f   :  { %1462 = vmatprep.subr.bf16.mxu1 %v1461_v54  ;;  %v1491_v46 = vpack.c.bf16 %v421_v45, %v419_v44  ;;  %v426_v48 = vld [vmem:[%s2850_s4 + $0x258] sm:$0xff]  ;;  %v423_v50 = vld [vmem:[%s2850_s4 + $0x240] sm:$0xff]  ;;  %v425_v51 = vld [vmem:[%s2850_s4 + $0x250] sm:$0xff] }
  0x40   :  { %199 = vmatmul.mubr.f32.gmra.mrb[10].mxu0 %v61_v52  ;;  %v1493_v49 = vpack.c.bf16 %v426_v48, %v424_v47  ;;  %v1495_v52 = vpack.c.bf16 %v425_v51, %v423_v50  ;;  %v428_v53 = vld [vmem:[%s2850_s4 + $0x268] sm:$0xff]  ;;  %v430_v54 = vld [vmem:[%s2850_s4 + $0x278] sm:$0xff]  ;;  %v427_v56 = vld [vmem:[%s2850_s4 + $0x260] sm:$0xff] }
  0x41   :  { %204 = vmatprep.mubr.f32.mxu0 %v1729_v7  ;;  %v1497_v55 = vpack.c.bf16 %v430_v54, %v428_v53  ;;  %v429_v57 = vld [vmem:[%s2850_s4 + $0x270] sm:$0xff]  ;;  %v431_v62 = vld [vmem:[%s2850_s4 + $0x280] sm:$0xff]  ;;  %v436_v1 = vld [vmem:[%s2850_s4 + $0x2a8] sm:$0xff] }
  0x42   :  { %1464 = vmatpush1.bf16.msra.mxu1 %v1463_v60  ;;  %v1499_v58 = vpack.c.bf16 %v429_v57, %v427_v56  ;;  %v434_v60 = vld [vmem:[%s2850_s4 + $0x298] sm:$0xff]  ;;  %v433_v63 = vld [vmem:[%s2850_s4 + $0x290] sm:$0xff]  ;;  %v440_v8 = vld [vmem:[%s2850_s4 + $0x2c8] sm:$0xff] }
  0x43   :  { %1466 = vmatprep.subr.bf16.mxu1 %v1465_v61  ;;  %v1503_v0 = vpack.c.bf16 %v433_v63, %v431_v62  ;;  %v437_v5 = vld [vmem:[%s2850_s4 + $0x2b0] sm:$0xff]  ;;  %v442_v9 = vld [vmem:[%s2850_s4 + $0x2d8] sm:$0xff]  ;;  %v444_v14 = vld [vmem:[%s2850_s4 + $0x2e8] sm:$0xff] }
  0x44   :  { %205 = vmatmul.mubr.f32.gmra.mrb[12].mxu0 %v62_v59  ;;  %v432_v59 = vld [vmem:[%s2850_s4 + $0x288] sm:$0xff]  ;;  %v447_v23 = vld [vmem:[%s2850_s4 + $0x300] sm:$0xff]  ;;  %v449_v24 = vld [vmem:[%s2850_s4 + $0x310] sm:$0xff] }
  0x45   :  { %210 = vmatprep.mubr.f32.mxu0 %v1729_v7  ;;  %v1501_v61 = vpack.c.bf16 %v434_v60, %v432_v59  ;;  %v452_v26 = vld [vmem:[%s2850_s4 + $0x328] sm:$0xff]  ;;  %v454_v27 = vld [vmem:[%s2850_s4 + $0x338] sm:$0xff]  ;;  %v451_v29 = vld [vmem:[%s2850_s4 + $0x320] sm:$0xff] }
  0x46   :  { %1468 = vmatpush1.bf16.msra.mxu1 %v1467_v3  ;;  %v453_v30 = vld [vmem:[%s2850_s4 + $0x330] sm:$0xff]  ;;  %v456_v32 = vld [vmem:[%s2850_s4 + $0x348] sm:$0xff]  ;;  %v458_v33 = vld [vmem:[%s2850_s4 + $0x358] sm:$0xff] }
  0x47   :  { %1470 = vmatprep.subr.bf16.mxu1 %v1469_v4  ;;  %v435_v4 = vld [vmem:[%s2850_s4 + $0x2a0] sm:$0xff]  ;;  %v457_v36 = vld [vmem:[%s2850_s4 + $0x350] sm:$0xff]  ;;  %v460_v38 = vld [vmem:[%s2850_s4 + $0x368] sm:$0xff] }
  0x48   :  { %211 = vmatmul.mubr.f32.gmra.mrb[14].mxu0 %v63_v2  ;;  %v438_v2 = vld [vmem:[%s2850_s4 + $0x2b8] sm:$0xff]  ;;  %v1507_v6 = vpack.c.bf16 %v437_v5, %v435_v4  ;;  %v455_v35 = vld [vmem:[%s2850_s4 + $0x340] sm:$0xff]  ;;  %v461_v42 = vld [vmem:[%s2850_s4 + $0x370] sm:$0xff] }
  0x49   :  { %216 = vmatprep.mubr.f32.mxu0 %v1729_v7  ;;  %v1505_v3 = vpack.c.bf16 %v438_v2, %v436_v1  ;;  %v462_v39 = vld [vmem:[%s2850_s4 + $0x378] sm:$0xff]  ;;  %v459_v41 = vld [vmem:[%s2850_s4 + $0x360] sm:$0xff]  ;;  %v464_v44 = vld [vmem:[%s2850_s4 + $0x388] sm:$0xff] }
  0x4a   :  { %1472 = vmatpush1.bf16.msra.mxu1 %v1471_v11  ;;  %v439_v11 = vld [vmem:[%s2850_s4 + $0x2c0] sm:$0xff]  ;;  %v466_v45 = vld [vmem:[%s2850_s4 + $0x398] sm:$0xff]  ;;  %v465_v48 = vld [vmem:[%s2850_s4 + $0x390] sm:$0xff] }
  0x4b   :  { %1474 = vmatprep.subr.bf16.mxu1 %v1473_v12  ;;  %v441_v12 = vld [vmem:[%s2850_s4 + $0x2d0] sm:$0xff]  ;;  %v463_v47 = vld [vmem:[%s2850_s4 + $0x380] sm:$0xff]  ;;  %v468_v50 = vld [vmem:[%s2850_s4 + $0x3a8] sm:$0xff] }
  0x4c   :  { %217 = vmatmul.mubr.f32.gmra.mrb[16].mxu0 %v64_v10  ;;  %v1509_v10 = vpack.c.bf16 %v442_v9, %v440_v8  ;;  %v1511_v13 = vpack.c.bf16 %v441_v12, %v439_v11  ;;  %v470_v51 = vld [vmem:[%s2850_s4 + $0x3b8] sm:$0xff]  ;;  %v467_v53 = vld [vmem:[%s2850_s4 + $0x3a0] sm:$0xff]  ;;  %v469_v54 = vld [vmem:[%s2850_s4 + $0x3b0] sm:$0xff] }
  0x4d   :  { %222 = vmatprep.mubr.f32.mxu0 %v1729_v7  ;;  %v472_v56 = vld [vmem:[%s2850_s4 + $0x3c8] sm:$0xff]  ;;  %v474_v57 = vld [vmem:[%s2850_s4 + $0x3d8] sm:$0xff]  ;;  %v471_v59 = vld [vmem:[%s2850_s4 + $0x3c0] sm:$0xff] }
  0x4e   :  { %1476 = vmatpush1.bf16.msra.mxu1 %v1475_v16  ;;  %v473_v60 = vld [vmem:[%s2850_s4 + $0x3d0] sm:$0xff]  ;;  %v476_v62 = vld [vmem:[%s2850_s4 + $0x3e8] sm:$0xff]  ;;  %v478_v63 = vld [vmem:[%s2850_s4 + $0x3f8] sm:$0xff] }
  0x4f   :  { %1478 = vmatprep.subr.bf16.mxu1 %v1477_v25  ;;  %v1519_v25 = vpack.c.bf16 %v449_v24, %v447_v23  ;;  %v475_v1 = vld [vmem:[%s2850_s4 + $0x3e0] sm:$0xff]  ;;  %v477_v2 = vld [vmem:[%s2850_s4 + $0x3f0] sm:$0xff]  ;;  %v784_v5 = vld [vmem:[%s2854_s8 + $0x88] sm:$0xff] }
  0x50   :  { %223 = vmatmul.mubr.f32.gmra.mrb[18].mxu0 %v65_v15  ;;  %v446_v15 = vld [vmem:[%s2850_s4 + $0x2f8] sm:$0xff]  ;;  %v783_v4 = vld [vmem:[%s2854_s8 + $0x80] sm:$0xff]  ;;  %v768_v9 = vld [vmem:[%s2854_s8 + $0x8] sm:$0xff] }
  0x51   :  { %228 = vmatprep.mubr.f32.mxu0 %v1729_v7  ;;  %v1513_v16 = vpack.c.bf16 %v446_v15, %v444_v14  ;;  %v1549_v8 = vpack.c.bf16 %v784_v5, %v783_v4  ;;  %v786_v11 = vld [vmem:[%s2854_s8 + $0x98] sm:$0xff]  ;;  %v769_v14 = vld [vmem:[%s2854_s8 + $0x10] sm:$0xff]  ;;  %v2453_v4 = vld [vmem:[%s2849_s3] ss:$0 sm:$0xff] }
  0x52   :  { %1480 = vmatpush1.bf16.msra.mxu1 %v1479_v28  ;;  %v1521_v28 = vpack.c.bf16 %v454_v27, %v452_v26  ;;  %v770_v15 = vld [vmem:[%s2854_s8 + $0x18] sm:$0xff]  ;;  %v773_v26 = vld [vmem:[%s2854_s8 + $0x30] sm:$0xff] }
  0x53   :  { %1482 = vmatprep.subr.bf16.mxu1 %v1481_v31  ;;  %v1523_v31 = vpack.c.bf16 %v453_v30, %v451_v29  ;;  %1550 = vmatprep.subr.bf16.mxu0 %v1549_v8  ;;  %v790_v23 = vld [vmem:[%s2854_s8 + $0xb8] sm:$0xff]  ;;  %v792_v29 = vld [vmem:[%s2854_s8 + $0xc8] sm:$0xff] }
  0x54   :  { %229 = vmatmul.mubr.f32.gmra.mrb[20].mxu0 %v66_v17  ;;  %v443_v17 = vld [vmem:[%s2850_s4 + $0x2e0] sm:$0xff]  ;;  %v774_v27 = vld [vmem:[%s2854_s8 + $0x38] sm:$0xff] }
  0x55   :  { %234 = vmatprep.mubr.f32.mxu0 %v1729_v7  ;;  %v1563_v30 = vpack.c.bf16 %v774_v27, %v773_v26 }
  0x56   :  { %1484 = vmatpush1.bf16.msra.mxu1 %v1483_v34  ;;  %v1525_v34 = vpack.c.bf16 %v458_v33, %v456_v32  ;;  %v775_v32 = vld [vmem:[%s2854_s8 + $0x40] sm:$0xff]  ;;  %v776_v33 = vld [vmem:[%s2854_s8 + $0x48] sm:$0xff] }
  0x57   :  { %1486 = vmatprep.subr.bf16.mxu1 %v1485_v37  ;;  %v1527_v37 = vpack.c.bf16 %v457_v36, %v455_v35 }
  0x58   :  { %235 = vmatmul.mubr.f32.gmra.mrb[22].mxu0 %v67_v18  ;;  %v445_v18 = vld [vmem:[%s2850_s4 + $0x2f0] sm:$0xff] }
  0x59   :  { %240 = vmatprep.mubr.f32.mxu0 %v1729_v7  ;;  %556 = vmatmul.mubr.f32.vlgmr.msra.gmra.mrb[0].mxu1 %v1729_v7 }
  0x5a   :  { %1488 = vmatpush1.bf16.msra.mxu1 %v1487_v40  ;;  %v1529_v40 = vpack.c.bf16 %v462_v39, %v460_v38 }
  0x5b   :  { %1490 = vmatprep.subr.bf16.mxu1 %v1489_v43  ;;  %v1531_v43 = vpack.c.bf16 %v461_v42, %v459_v41 }
  0x5c   :  { %241 = vmatmul.mubr.f32.gmra.mrb[24].mxu0 %v68_v19  ;;  %v1515_v19 = vpack.c.bf16 %v445_v18, %v443_v17  ;;  %v788_v17 = vld [vmem:[%s2854_s8 + $0xa8] sm:$0xff]  ;;  %v1555_v18 = vpack.c.bf16 %v770_v15, %v769_v14 }
  0x5d   :  { %246 = vmatprep.mubr.f32.mxu0 %v1729_v7 }
  0x5e   :  { %1492 = vmatpush1.bf16.msra.mxu1 %v1491_v46  ;;  %v1533_v46 = vpack.c.bf16 %v466_v45, %v464_v44 }
  0x5f   :  { %1494 = vmatprep.subr.bf16.mxu1 %v1493_v49  ;;  %v1535_v49 = vpack.c.bf16 %v465_v48, %v463_v47 }
  0x60   :  { %247 = vmatmul.mubr.f32.gmra.mrb[26].mxu0 %v69_v20  ;;  %v448_v20 = vld [vmem:[%s2850_s4 + $0x308] sm:$0xff] }
  0x61   :  { %252 = vmatprep.mubr.f32.mxu0 %v1729_v7 }
  0x62   :  { %1496 = vmatpush1.bf16.msra.mxu1 %v1495_v52  ;;  %v1537_v52 = vpack.c.bf16 %v470_v51, %v468_v50 }
  0x63   :  { %1498 = vmatprep.subr.bf16.mxu1 %v1497_v55  ;;  %v1539_v55 = vpack.c.bf16 %v469_v54, %v467_v53 }
  0x64   :  { %253 = vmatmul.mubr.f32.gmra.mrb[28].mxu0 %v70_v21  ;;  %v450_v21 = vld [vmem:[%s2850_s4 + $0x318] sm:$0xff] }
  0x65   :  { %258 = vmatprep.mubr.f32.mxu0 %v1729_v7 }
  0x66   :  { %1500 = vmatpush1.bf16.msra.mxu1 %v1499_v58  ;;  %v1541_v58 = vpack.c.bf16 %v474_v57, %v472_v56 }
  0x67   :  { %1502 = vmatprep.subr.bf16.mxu1 %v1501_v61  ;;  %v1543_v61 = vpack.c.bf16 %v473_v60, %v471_v59 }
  0x68   :  { %259 = vmatmul.mubr.f32.gmra.mrb[30].mxu0 %v71_v22  ;;  %v1517_v22 = vpack.c.bf16 %v450_v21, %v448_v20  ;;  %v771_v20 = vld [vmem:[%s2854_s8 + $0x20] sm:$0xff]  ;;  %v772_v21 = vld [vmem:[%s2854_s8 + $0x28] sm:$0xff] }
  0x69   :  { %v1559_v24 = vpack.c.bf16 %v772_v21, %v771_v20 }
  0x6a   :  { %1504 = vmatpush1.bf16.msra.mxu1 %v1503_v0  ;;  %v1545_v0 = vpack.c.bf16 %v478_v63, %v476_v62  ;;  %v2448_v63 = vld [vmem:[%s2848_s2] ss:$0 sm:$0xff] }
  0x6b   :  { %1506 = vmatprep.subr.bf16.mxu1 %v1505_v3  ;;  %v1547_v3 = vpack.c.bf16 %v477_v2, %v475_v1 }
  0x6e   :  { %1508 = vmatpush1.bf16.msra.mxu1 %v1507_v6  ;;  %v767_v6 = vld [vmem:[%s2854_s8] sm:$0xff] }
  0x6f   :  { %1510 = vmatprep.subr.bf16.mxu1 %v1509_v10  ;;  %v785_v10 = vld [vmem:[%s2854_s8 + $0x90] sm:$0xff]  ;;  %v1551_v12 = vpack.c.bf16 %v768_v9, %v767_v6 }
  0x71   :  { %1552 = vmatpush3.bf16.msra.mxu0 %v1551_v12 }
  0x72   :  { %1512 = vmatpush1.bf16.msra.mxu1 %v1511_v13  ;;  %v1553_v13 = vpack.c.bf16 %v786_v11, %v785_v10 }
  0x73   :  { %1514 = vmatprep.subr.bf16.mxu1 %v1513_v16  ;;  %v787_v16 = vld [vmem:[%s2854_s8 + $0xa0] sm:$0xff] }
  0x74   :  { %1554 = vmatprep.subr.bf16.mxu0 %v1553_v13 }
  0x75   :  { %1556 = vmatpush3.bf16.msra.mxu0 %v1555_v18 }
  0x76   :  { %1516 = vmatpush1.bf16.msra.mxu1 %v1515_v19  ;;  %v1557_v19 = vpack.c.bf16 %v788_v17, %v787_v16 }
  0x77   :  { %1518 = vmatprep.subr.bf16.mxu1 %v1517_v22  ;;  %v789_v22 = vld [vmem:[%s2854_s8 + $0xb0] sm:$0xff] }
  0x78   :  { %1558 = vmatprep.subr.bf16.mxu0 %v1557_v19 }
  0x79   :  { %1560 = vmatpush3.bf16.msra.mxu0 %v1559_v24 }
  0x7a   :  { %1520 = vmatpush1.bf16.msra.mxu1 %v1519_v25  ;;  %v1561_v25 = vpack.c.bf16 %v790_v23, %v789_v22 }
  0x7b   :  { %1522 = vmatprep.subr.bf16.mxu1 %v1521_v28  ;;  %v791_v28 = vld [vmem:[%s2854_s8 + $0xc0] sm:$0xff] }
  0x7c   :  { %1562 = vmatprep.subr.bf16.mxu0 %v1561_v25 }
  0x7d   :  { %1564 = vmatpush3.bf16.msra.mxu0 %v1563_v30 }
  0x7e   :  { %1524 = vmatpush1.bf16.msra.mxu1 %v1523_v31  ;;  %v1565_v31 = vpack.c.bf16 %v792_v29, %v791_v28 }
  0x7f   :  { %1526 = vmatprep.subr.bf16.mxu1 %v1525_v34  ;;  %v1567_v34 = vpack.c.bf16 %v776_v33, %v775_v32 }
  0x80   :  { %1566 = vmatprep.subr.bf16.mxu0 %v1565_v31 }
  0x81   :  { %1568 = vmatpush3.bf16.msra.mxu0 %v1567_v34 }
  0x82   :  { %1528 = vmatpush1.bf16.msra.mxu1 %v1527_v37 }
  0x83   :  { %1530 = vmatprep.subr.bf16.mxu1 %v1529_v40 }
  0x86   :  { %1532 = vmatpush1.bf16.msra.mxu1 %v1531_v43 }
  0x87   :  { %1534 = vmatprep.subr.bf16.mxu1 %v1533_v46 }
  0x8a   :  { %1536 = vmatpush1.bf16.msra.mxu1 %v1535_v49 }
  0x8b   :  { %1538 = vmatprep.subr.bf16.mxu1 %v1537_v52 }
  0x8e   :  { %1540 = vmatpush1.bf16.msra.mxu1 %v1539_v55 }
  0x8f   :  { %1542 = vmatprep.subr.bf16.mxu1 %v1541_v58 }
  0x92   :  { %1544 = vmatpush1.bf16.msra.mxu1 %v1543_v61 }
  0x93   :  { %1546 = vmatprep.subr.bf16.mxu1 %v1545_v0 }
  0x96   :  { %1548 = vmatpush1.bf16.msra.mxu1 %v1547_v3 }
  0xff   :  { %v170_v35 = vpop.f32.mrb[0].mxu0 }
 0x100   :  { %v172_v36 = vpop.f32.mrb[1].mxu0  ;;  %v265_v52 = vmax.f32 %v170_v35, 0.0 }
 0x101   :  { %v266_v55 = vmax.f32 %v172_v36, 0.0 }
 0x103   :  { %v176_v37 = vpop.f32.mrb[2].mxu0 }
 0x104   :  { %v178_v38 = vpop.f32.mrb[3].mxu0  ;;  %v267_v60 = vmax.f32 %v176_v37, 0.0 }
 0x105   :  { %v268_v0 = vmax.f32 %v178_v38, 0.0 }
 0x107   :  { %v182_v39 = vpop.f32.mrb[4].mxu0 }
 0x108   :  { %v184_v40 = vpop.f32.mrb[5].mxu0  ;;  %v269_v9 = vmax.f32 %v182_v39, 0.0 }
 0x109   :  { %v270_v12 = vmax.f32 %v184_v40, 0.0 }
 0x10b   :  { %v188_v41 = vpop.f32.mrb[6].mxu0 }
 0x10c   :  { %v190_v42 = vpop.f32.mrb[7].mxu0  ;;  %v271_v20 = vmax.f32 %v188_v41, 0.0 }
 0x10d   :  { %v272_v23 = vmax.f32 %v190_v42, 0.0 }
 0x10f   :  { %v2429_v43 = vpop.f32.mrb[8].mxu0 }
 0x110   :  { %v2431_v44 = vpop.f32.mrb[9].mxu0  ;;  %v273_v31 = vmax.f32 %v2429_v43, 0.0 }
 0x111   :  { %v274_v34 = vmax.f32 %v2431_v44, 0.0 }
 0x113   :  { %v2433_v45 = vpop.f32.mrb[10].mxu0 }
 0x114   :  { %v2435_v46 = vpop.f32.mrb[11].mxu0  ;;  %v275_v42 = vmax.f32 %v2433_v45, 0.0 }
 0x117   :  { %v2437_v47 = vpop.f32.mrb[12].mxu0 }
 0x118   :  { %v2439_v48 = vpop.f32.mrb[13].mxu0 }
 0x11b   :  { %v2441_v49 = vpop.f32.mrb[14].mxu0 }
 0x11c   :  { %v2443_v50 = vpop.f32.mrb[15].mxu0 }
 0x11f   :  { %v218_v51 = vpop.f32.mrb[16].mxu0 }
 0x120   :  { %v281_v53 = vmax.f32 %v218_v51, 0.0  ;;  %v220_v54 = vpop.f32.mrb[17].mxu0 }
 0x121   :  { %v282_v56 = vmax.f32 %v220_v54, 0.0 }
 0x122   :  { %v297_v57 = vmax.f32 %v265_v52, %v281_v53  ;;  %v276_v52 = vmax.f32 %v2435_v46, 0.0 }
 0x123   :  { %v298_v58 = vmax.f32 %v266_v55, %v282_v56  ;;  %v224_v59 = vpop.f32.mrb[18].mxu0 }
 0x124   :  { %v283_v61 = vmax.f32 %v224_v59, 0.0  ;;  %v226_v62 = vpop.f32.mrb[19].mxu0  ;;  %v277_v59 = vmax.f32 %v2437_v47, 0.0  ;;  %v280_v47 = vmax.f32 %v2443_v50, 0.0 }
 0x125   :  { %v313_v1 = vmax.f32 %v297_v57, %v298_v58  ;;  %v284_v2 = vmax.f32 %v226_v62, 0.0 }
 0x126   :  { %v299_v3 = vmax.f32 %v267_v60, %v283_v61  ;;  %v278_v61 = vmax.f32 %v2439_v48, 0.0 }
 0x127   :  { %v300_v5 = vmax.f32 %v268_v0, %v284_v2  ;;  %v230_v6 = vpop.f32.mrb[20].mxu0  ;;  %v328_v8 = vmul.f32 %v2448_v63, %v313_v1 }
 0x128   :  { %v285_v10 = vmax.f32 %v230_v6, 0.0  ;;  %v232_v11 = vpop.f32.mrb[21].mxu0  ;;  %v279_v6 = vmax.f32 %v2441_v49, 0.0 }
 0x129   :  { %v314_v13 = vmax.f32 %v299_v3, %v300_v5  ;;  %v286_v14 = vmax.f32 %v232_v11, 0.0  ;;  %v2457_v15 = vadd.f32 %v2453_v4, %v328_v8 }
 0x12a   :  { %v301_v16 = vmax.f32 %v269_v9, %v285_v10 }
 0x12b   :  { %v329_v17 = vmul.f32 %v2448_v63, %v314_v13  ;;  %v302_v18 = vmax.f32 %v270_v12, %v286_v14  ;;  %v236_v19 = vpop.f32.mrb[22].mxu0  ;;  %561 = vmatprep.mubr.f32.mxu1 %v2457_v15 }
 0x12c   :  { %v287_v21 = vmax.f32 %v236_v19, 0.0  ;;  %v238_v22 = vpop.f32.mrb[23].mxu0  ;;  %562 = vmatmul.mubr.f32.gmra.mrb[2].mxu1 %v1729_v7 }
 0x12d   :  { %v315_v24 = vmax.f32 %v301_v16, %v302_v18  ;;  %v288_v25 = vmax.f32 %v238_v22, 0.0  ;;  %v2463_v26 = vadd.f32 %v2453_v4, %v329_v17  ;;  %v794_v18 = vld [vmem:[%s2854_s8 + $0xd8] sm:$0xff]  ;;  %v796_v22 = vld [vmem:[%s2854_s8 + $0xe8] sm:$0xff] }
 0x12e   :  { %v303_v27 = vmax.f32 %v271_v20, %v287_v21  ;;  %v795_v21 = vld [vmem:[%s2854_s8 + $0xe0] sm:$0xff] }
 0x12f   :  { %v330_v28 = vmul.f32 %v2448_v63, %v315_v24  ;;  %v304_v29 = vmax.f32 %v272_v23, %v288_v25  ;;  %v242_v30 = vpop.f32.mrb[24].mxu0  ;;  %567 = vmatprep.mubr.f32.mxu1 %v2463_v26  ;;  %v779_v23 = vld [vmem:[%s2854_s8 + $0x60] sm:$0xff]  ;;  %v1573_v24 = vpack.c.bf16 %v796_v22, %v795_v21  ;;  %v780_v25 = vld [vmem:[%s2854_s8 + $0x68] sm:$0xff] }
 0x130   :  { %v289_v32 = vmax.f32 %v242_v30, 0.0  ;;  %v244_v33 = vpop.f32.mrb[25].mxu0  ;;  %568 = vmatmul.mubr.f32.gmra.mrb[4].mxu1 %v2457_v15  ;;  %v781_v30 = vld [vmem:[%s2854_s8 + $0x70] sm:$0xff]  ;;  %v799_v21 = vld [vmem:[%s2854_s8 + $0x100] sm:$0xff]  ;;  %v800_v22 = vld [vmem:[%s2854_s8 + $0x108] sm:$0xff] }
 0x131   :  { %v316_v35 = vmax.f32 %v303_v27, %v304_v29  ;;  %v290_v36 = vmax.f32 %v244_v33, 0.0  ;;  %v345_v37 = vadd.f32 %v2453_v4, %v330_v28  ;;  %v797_v27 = vld [vmem:[%s2854_s8 + $0xf0] sm:$0xff]  ;;  %v798_v28 = vld [vmem:[%s2854_s8 + $0xf8] sm:$0xff]  ;;  %v815_v33 = vld [vmem:[%s2854_s8 + $0x180] sm:$0xff] }
 0x132   :  { %v305_v38 = vmax.f32 %v273_v31, %v289_v32  ;;  %v1577_v29 = vpack.c.bf16 %v798_v28, %v797_v27  ;;  %v782_v31 = vld [vmem:[%s2854_s8 + $0x78] sm:$0xff]  ;;  %v817_v27 = vld [vmem:[%s2854_s8 + $0x190] sm:$0xff] }
 0x133   :  { %v331_v39 = vmul.f32 %v2448_v63, %v316_v35  ;;  %v306_v40 = vmax.f32 %v274_v34, %v290_v36  ;;  %v248_v41 = vpop.f32.mrb[26].mxu0  ;;  %573 = vmatprep.mubr.f32.mxu1 %v345_v37  ;;  %v1579_v32 = vpack.c.bf16 %v782_v31, %v781_v30  ;;  %v816_v34 = vld [vmem:[%s2854_s8 + $0x188] sm:$0xff]  ;;  %v481_v36 = vlaneseq  ;;  %v818_v28 = vld [vmem:[%s2854_s8 + $0x198] sm:$0xff] }
 0x134   :  { %v291_v51 = vmax.f32 %v248_v41, 0.0  ;;  %v250_v43 = vpop.f32.mrb[27].mxu0  ;;  %574 = vmatmul.mubr.f32.gmra.mrb[6].mxu1 %v2463_v26  ;;  %v1581_v35 = vpack.c.bf16 %v816_v34, %v815_v33  ;;  %v1583_v33 = vpack.c.bf16 %v800_v22, %v799_v21  ;;  %v811_v22 = vld [vmem:[%s2854_s8 + $0x160] sm:$0xff] }
 0x135   :  { %v317_v53 = vmax.f32 %v305_v38, %v306_v40  ;;  %v292_v44 = vmax.f32 %v250_v43, 0.0  ;;  %v346_v54 = vadd.f32 %v2453_v4, %v331_v39  ;;  %v479_v39 = vld [vmem:[%s2851_s5] sm:$0x3] }
 0x136   :  { %v307_v55 = vmax.f32 %v275_v42, %v291_v51 }
 0x137   :  { %v332_v56 = vmul.f32 %v2448_v63, %v317_v53  ;;  %v308_v57 = vmax.f32 %v276_v52, %v292_v44  ;;  %v254_v58 = vpop.f32.mrb[28].mxu0  ;;  %579 = vmatprep.mubr.f32.mxu1 %v346_v54 }
 0x138   :  { %v293_v60 = vmax.f32 %v254_v58, 0.0  ;;  %v256_v45 = vpop.f32.mrb[29].mxu0  ;;  %580 = vmatmul.mubr.f32.gmra.mrb[8].mxu1 %v345_v37 }
 0x139   :  { %v318_v62 = vmax.f32 %v307_v55, %v308_v57  ;;  %v294_v0 = vmax.f32 %v256_v45, 0.0  ;;  %v347_v46 = vadd.f32 %v2453_v4, %v332_v56 }
 0x13a   :  { %v309_v1 = vmax.f32 %v277_v59, %v293_v60 }
 0x13b   :  { %v333_v2 = vmul.f32 %v2448_v63, %v318_v62  ;;  %v310_v3 = vmax.f32 %v278_v61, %v294_v0  ;;  %v260_v5 = vpop.f32.mrb[30].mxu0  ;;  %585 = vmatprep.mubr.f32.mxu1 %v347_v46 }
 0x13c   :  { %v295_v8 = vmax.f32 %v260_v5, 0.0  ;;  %v262_v9 = vpop.f32.mrb[31].mxu0  ;;  %586 = vmatmul.mubr.f32.gmra.mrb[10].mxu1 %v346_v54 }
 0x13d   :  { %v319_v10 = vmax.f32 %v309_v1, %v310_v3  ;;  %v296_v11 = vmax.f32 %v262_v9, 0.0  ;;  %v348_v48 = vadd.f32 %v2453_v4, %v333_v2 }
 0x13e   :  { %v311_v12 = vmax.f32 %v279_v6, %v295_v8 }
 0x13f   :  { %v312_v13 = vmax.f32 %v280_v47, %v296_v11  ;;  %591 = vmatprep.mubr.f32.mxu1 %v348_v48  ;;  %v334_v14 = vmul.f32 %v2448_v63, %v319_v10 }
 0x140   :  { %592 = vmatmul.mubr.f32.gmra.mrb[12].mxu1 %v347_v46 }
 0x141   :  { %v320_v16 = vmax.f32 %v311_v12, %v312_v13  ;;  %v349_v17 = vadd.f32 %v2453_v4, %v334_v14 }
 0x143   :  { %597 = vmatprep.mubr.f32.mxu1 %v349_v17  ;;  %v335_v49 = vmul.f32 %v2448_v63, %v320_v16  ;;  %v777_v63 = vld [vmem:[%s2854_s8 + $0x50] sm:$0xff]  ;;  %v2553_v16 = vld [vmem:[%s2852_s6] ss:$0 sm:$0xff] }
 0x144   :  { %598 = vmatmul.mubr.f32.gmra.mrb[14].mxu1 %v348_v48 }
 0x145   :  { %668 = vmatprep.mubr.f32.mxu1 %v2463_v26  ;;  %v350_v50 = vadd.f32 %v2453_v4, %v335_v49  ;;  %v778_v4 = vld [vmem:[%s2854_s8 + $0x58] sm:$0xff] }
 0x146   :  { %v1571_v20 = vpack.c.bf16 %v778_v4, %v777_v63 }
 0x148   :  { %669 = vmatmul.mubr.f32.vlgmr.msra.gmra.mrb[0].mxu1 %v2457_v15  ;;  %v793_v15 = vld [vmem:[%s2854_s8 + $0xd0] sm:$0xff] }
 0x149   :  { %674 = vmatprep.mubr.f32.mxu1 %v345_v37  ;;  %v1569_v19 = vpack.c.bf16 %v794_v18, %v793_v15 }
 0x14b   :  { %1570 = vmatprep.subr.bf16.mxu0 %v1569_v19 }
 0x14c   :  { %675 = vmatmul.mubr.f32.gmra.mrb[2].mxu1 %v2463_v26  ;;  %1572 = vmatpush3.bf16.msra.mxu0 %v1571_v20  ;;  %v1575_v26 = vpack.c.bf16 %v780_v25, %v779_v23 }
 0x14d   :  { %680 = vmatprep.mubr.f32.mxu1 %v346_v54  ;;  %1574 = vmatprep.subr.bf16.mxu0 %v1573_v24 }
 0x150   :  { %681 = vmatmul.mubr.f32.gmra.mrb[4].mxu1 %v345_v37  ;;  %1576 = vmatpush3.bf16.msra.mxu0 %v1575_v26  ;;  %v482_v37 = vshrl.u32 %v481_v36, 7  ;;  %v2571_v26 = vld [vmem:[%s2853_s7] ss:$0 sm:$0xff]  ;;  %s1705_s7 = scalar_lea.vmem %s1214_s28, 128 }
 0x151   :  { %686 = vmatprep.mubr.f32.mxu1 %v347_v46  ;;  %1578 = vmatprep.subr.bf16.mxu0 %v1577_v29  ;;  %p1706_p0 = scmp.ne.s32.totalorder %s1214_s28, %s1705_s7  ;;  %p1711_p2 = scmp.lt.s32.totalorder %s1705_s7, %s1705_s7 }
 0x152   :  { %v483_v38 = vsub.s32 0, %v482_v37  ;;  %v487_v40 = vsub.s32 1, %v482_v37  ;;  %v1585_v37 = vpack.c.bf16 %v818_v28, %v817_v27 }
 0x153   :  { %p1712_p3 = por %p1711_p2, %p1710_p1 }
 0x154   :  { %687 = vmatmul.mubr.f32.gmra.mrb[6].mxu1 %v346_v54  ;;  %1580 = vmatpush3.bf16.msra.mxu0 %v1579_v32  ;;  %v2537_v41 = vrot.slane %v479_v39, %v483_v38  ;;  %v2539_v42 = vrot.slane %v479_v39, %v487_v40  ;;  %v801_v38 = vld [vmem:[%s2854_s8 + $0x110] sm:$0xff]  ;;  %v802_v39 = vld [vmem:[%s2854_s8 + $0x118] sm:$0xff] }
 0x155   :  { %692 = vmatprep.mubr.f32.mxu1 %v348_v48  ;;  %1582 = vmatprep.subr.bf16.mxu0 %v1581_v35  ;;  %p1713_p4 = pnand %p1712_p3, %p1706_p0 }
 0x158   :  { %693 = vmatmul.mubr.f32.gmra.mrb[8].mxu1 %v347_v46 }
 0x159   :  { %698 = vmatprep.mubr.f32.mxu1 %v349_v17 }
 0x15c   :  { %699 = vmatmul.mubr.f32.gmra.mrb[10].mxu1 %v348_v48 }
 0x15d   :  { %704 = vmatprep.mubr.f32.mxu1 %v350_v50 }
 0x160   :  { %705 = vmatmul.mubr.f32.gmra.mrb[12].mxu1 %v349_v17 }
 0x161   :  { %710 = vmatprep.mubr.f32.mxu1 %v1729_v7 }
 0x164   :  { %711 = vmatmul.mubr.f32.gmra.mrb[14].mxu1 %v350_v50 }
 0x21b   :  { %v670_v51 = vpop.f32.mrb[0].mxu1 }
 0x21c   :  { %v1669_v43 = vadd.f32 %v670_v51, %v2537_v41  ;;  %v672_v52 = vpop.f32.mrb[1].mxu1 }
 0x21d   :  { %v1670_v53 = vadd.f32 %v672_v52, %v2539_v42  ;;  %v820_v52 = vld [vmem:[%s2854_s8 + $0x1a8] sm:$0xff] }
 0x21e   :  { %v717_v44 = vmax.f32 %v1669_v43, 0.0  ;;  %v819_v43 = vld [vmem:[%s2854_s8 + $0x1a0] sm:$0xff] }
 0x21f   :  { %v718_v54 = vmax.f32 %v1670_v53, 0.0  ;;  %v676_v55 = vpop.f32.mrb[2].mxu1 }
 0x220   :  { %v1671_v56 = vadd.f32 %v676_v55, %v2537_v41  ;;  %v678_v57 = vpop.f32.mrb[3].mxu1 }
 0x221   :  { %v733_v58 = vmax.f32 %v717_v44, %v718_v54  ;;  %v1672_v59 = vadd.f32 %v678_v57, %v2539_v42 }
 0x222   :  { %v719_v60 = vmax.f32 %v1671_v56, 0.0  ;;  %v1587_v56 = vpack.c.bf16 %v802_v39, %v801_v38  ;;  %v999_v39 = vld [vmem:[%s2858_s12 + $0x20] sm:$0xff] }
 0x223   :  { %v720_v45 = vmax.f32 %v1672_v59, 0.0  ;;  %v682_v61 = vpop.f32.mrb[4].mxu1  ;;  %v1589_v59 = vpack.c.bf16 %v820_v52, %v819_v43  ;;  %v1001_v43 = vld [vmem:[%s2858_s12 + $0x30] sm:$0xff]  ;;  %v1002_v52 = vld [vmem:[%s2858_s12 + $0x38] sm:$0xff] }
 0x224   :  { %v1673_v62 = vadd.f32 %v682_v61, %v2537_v41  ;;  %v684_v0 = vpop.f32.mrb[5].mxu1 }
 0x225   :  { %v734_v46 = vmax.f32 %v719_v60, %v720_v45  ;;  %v1674_v1 = vadd.f32 %v684_v0, %v2539_v42  ;;  %v803_v60 = vld [vmem:[%s2854_s8 + $0x120] sm:$0xff]  ;;  %v804_v45 = vld [vmem:[%s2854_s8 + $0x128] sm:$0xff]  ;;  %v821_v0 = vld [vmem:[%s2854_s8 + $0x1b0] sm:$0xff] }
 0x226   :  { %v721_v2 = vmax.f32 %v1673_v62, 0.0 }
 0x227   :  { %v741_v3 = vmax.f32 %v733_v58, %v734_v46  ;;  %v722_v5 = vmax.f32 %v1674_v1, 0.0  ;;  %v688_v6 = vpop.f32.mrb[6].mxu1 }
 0x228   :  { %v1675_v8 = vadd.f32 %v688_v6, %v2537_v41  ;;  %v690_v9 = vpop.f32.mrb[7].mxu1 }
 0x229   :  { %v735_v47 = vmax.f32 %v721_v2, %v722_v5  ;;  %v1676_v10 = vadd.f32 %v690_v9, %v2539_v42  ;;  %v752_v19 = vmul.f32 %v2553_v16, %v741_v3  ;;  %v1591_v2 = vpack.c.bf16 %v804_v45, %v803_v60  ;;  %v805_v5 = vld [vmem:[%s2854_s8 + $0x130] sm:$0xff]  ;;  %v824_v9 = vld [vmem:[%s2854_s8 + $0x1c8] sm:$0xff] }
 0x22a   :  { %v723_v11 = vmax.f32 %v1675_v8, 0.0  ;;  %v823_v8 = vld [vmem:[%s2854_s8 + $0x1c0] sm:$0xff]  ;;  %v1008_v60 = vld [vmem:[%s2858_s12 + $0x68] sm:$0xff] }
 0x22b   :  { %v724_v48 = vmax.f32 %v1676_v10, 0.0  ;;  %v694_v12 = vpop.f32.mrb[8].mxu1  ;;  %v763_v36 = vadd.f32 %v2571_v26, %v752_v19  ;;  %v827_v19 = vld [vmem:[%s2854_s8 + $0x1e0] sm:$0xff] }
 0x22c   :  { %v1677_v13 = vadd.f32 %v694_v12, %v2537_v41  ;;  %v696_v14 = vpop.f32.mrb[9].mxu1  ;;  %v808_v12 = vld [vmem:[%s2854_s8 + $0x148] sm:$0xff] }
 0x22d   :  { %v736_v17 = vmax.f32 %v723_v11, %v724_v48  ;;  %v1678_v49 = vadd.f32 %v696_v14, %v2539_v42  ;;  %v1597_v11 = vpack.c.bf16 %v824_v9, %v823_v8  ;;  %v807_v48 = vld [vmem:[%s2854_s8 + $0x140] sm:$0xff]  ;;  %v825_v14 = vld [vmem:[%s2854_s8 + $0x1d0] sm:$0xff]  ;;  %v1098_v9 = vld [vmem:[%s2860_s14 + $0x18] sm:$0xff] }
 0x22e   :  { %v725_v50 = vmax.f32 %v1677_v13, 0.0  ;;  %v1097_v8 = vld [vmem:[%s2860_s14 + $0x10] sm:$0xff] }
 0x22f   :  { %v742_v15 = vmax.f32 %v735_v47, %v736_v17  ;;  %v726_v18 = vmax.f32 %v1678_v49, 0.0  ;;  %v700_v63 = vpop.f32.mrb[10].mxu1  ;;  %v826_v17 = vld [vmem:[%s2854_s8 + $0x1d8] sm:$0xff] }
 0x230   :  { %v1679_v4 = vadd.f32 %v700_v63, %v2537_v41  ;;  %v702_v20 = vpop.f32.mrb[11].mxu1  ;;  %v810_v63 = vld [vmem:[%s2854_s8 + $0x158] sm:$0xff] }
 0x231   :  { %v2564_v23 = vmax.f32 %v725_v50, %v726_v18  ;;  %v1680_v24 = vadd.f32 %v702_v20, %v2539_v42  ;;  %v753_v25 = vmul.f32 %v2553_v16, %v742_v15  ;;  %v1599_v50 = vpack.c.bf16 %v808_v12, %v807_v48  ;;  %v809_v18 = vld [vmem:[%s2854_s8 + $0x150] sm:$0xff]  ;;  %v1099_v12 = vld [vmem:[%s2860_s14 + $0x20] sm:$0xff] }
 0x232   :  { %v727_v29 = vmax.f32 %v1679_v4, 0.0  ;;  %v1601_v15 = vpack.c.bf16 %v826_v17, %v825_v14  ;;  %v828_v4 = vld [vmem:[%s2854_s8 + $0x1e8] sm:$0xff]  ;;  %v1603_v20 = vpack.c.bf16 %v810_v63, %v809_v18  ;;  %v1117_v14 = vld [vmem:[%s2860_s14 + $0xb0] sm:$0xff]  ;;  %v1118_v17 = vld [vmem:[%s2860_s14 + $0xb8] sm:$0xff] }
 0x233   :  { %v728_v30 = vmax.f32 %v1680_v24, 0.0  ;;  %v706_v31 = vpop.f32.mrb[12].mxu1  ;;  %v764_v32 = vadd.f32 %v2571_v26, %v753_v25  ;;  %v1605_v21 = vpack.c.bf16 %v828_v4, %v827_v19  ;;  %v829_v24 = vld [vmem:[%s2854_s8 + $0x1f0] sm:$0xff]  ;;  %v830_v25 = vld [vmem:[%s2854_s8 + $0x1f8] sm:$0xff]  ;;  %v1119_v63 = vld [vmem:[%s2860_s14 + $0xc0] sm:$0xff] }
 0x234   :  { %v1681_v34 = vadd.f32 %v706_v31, %v2537_v41  ;;  %v708_v35 = vpop.f32.mrb[13].mxu1  ;;  %v1609_v28 = vpack.c.bf16 %v830_v25, %v829_v24  ;;  %v1102_v18 = vld [vmem:[%s2860_s14 + $0x38] sm:$0xff]  ;;  %v1120_v19 = vld [vmem:[%s2860_s14 + $0xc8] sm:$0xff] }
 0x235   :  { %v2588_v40 = vmax.f32 %v727_v29, %v728_v30  ;;  %v1682_v51 = vadd.f32 %v708_v35, %v2539_v42  ;;  %902 = vmatprep.mubr.f32.mxu0 %v764_v32  ;;  %v813_v29 = vld [vmem:[%s2854_s8 + $0x170] sm:$0xff]  ;;  %v814_v30 = vld [vmem:[%s2854_s8 + $0x178] sm:$0xff]  ;;  %v996_v35 = vld [vmem:[%s2858_s12 + $0x8] sm:$0xff] }
 0x236   :  { %v729_v53 = vmax.f32 %v1681_v34, 0.0  ;;  %903 = vmatmul.mubr.f32.vlgmr.msra.gmra.mrb[32].mxu0 %v763_v36  ;;  %v1611_v31 = vpack.c.bf16 %v814_v30, %v813_v29  ;;  %v995_v34 = vld [vmem:[%s2858_s12] sm:$0xff]  ;;  %v997_v36 = vld [vmem:[%s2858_s12 + $0x10] sm:$0xff]  ;;  %v1122_v24 = vld [vmem:[%s2860_s14 + $0xd8] sm:$0xff] }
 0x237   :  { %v743_v44 = vmax.f32 %v2564_v23, %v2588_v40  ;;  %v730_v54 = vmax.f32 %v1682_v51, 0.0  ;;  %1584 = vmatpush3.bf16.msra.mxu0 %v1583_v33  ;;  %v712_v55 = vpop.f32.mrb[14].mxu1  ;;  %v812_v23 = vld [vmem:[%s2854_s8 + $0x168] sm:$0xff]  ;;  %v1106_v29 = vld [vmem:[%s2860_s14 + $0x58] sm:$0xff]  ;;  %v1123_v30 = vld [vmem:[%s2860_s14 + $0xe0] sm:$0xff] }
 0x238   :  { %v1683_v57 = vadd.f32 %v712_v55, %v2537_v41  ;;  %v714_v58 = vpop.f32.mrb[15].mxu1  ;;  %1586 = vmatprep.subr.bf16.mxu0 %v1585_v37  ;;  %v822_v41 = vld [vmem:[%s2854_s8 + $0x1b8] sm:$0xff]  ;;  %v1607_v27 = vpack.c.bf16 %v812_v23, %v811_v22  ;;  %v1730_v37 = vmov 0.0|0.0   ;;  %v1000_v40 = vld [vmem:[%s2858_s12 + $0x28] sm:$0xff]  ;;  %v1121_v23 = vld [vmem:[%s2860_s14 + $0xd0] sm:$0xff] }
 0x239   :  { %v739_v61 = vmax.f32 %v729_v53, %v730_v54  ;;  %v1684_v62 = vadd.f32 %v714_v58, %v2539_v42  ;;  %v1593_v3 = vpack.c.bf16 %v822_v41, %v821_v0  ;;  %v806_v42 = vld [vmem:[%s2854_s8 + $0x138] sm:$0xff]  ;;  %v754_v32 = vmul.f32 %v2553_v16, %v743_v44  ;;  %v1003_v44 = vld [vmem:[%s2858_s12 + $0x40] sm:$0xff]  ;;  %v1004_v54 = vld [vmem:[%s2858_s12 + $0x48] sm:$0xff] }
 0x23a   :  { %v731_v46 = vmax.f32 %v1683_v57, 0.0  ;;  %v1595_v10 = vpack.c.bf16 %v806_v42, %v805_v5  ;;  %v1620_v51 = vpack.c.bf16 %v1000_v40, %v999_v39  ;;  %v1623_v53 = vpack.c.bf16 %v1002_v52, %v1001_v43  ;;  %v1006_v57 = vld [vmem:[%s2858_s12 + $0x58] sm:$0xff]  ;;  %v1111_v41 = vld [vmem:[%s2860_s14 + $0x80] sm:$0xff]  ;;  %v1104_v22 = vld [vmem:[%s2860_s14 + $0x48] sm:$0xff] }
 0x23b   :  { %v732_v1 = vmax.f32 %v1684_v62, 0.0  ;;  %1588 = vmatpush3.bf16.msra.mxu0 %v1587_v56  ;;  %v765_v33 = vadd.f32 %v2571_v26, %v754_v32  ;;  %v1626_v55 = vpack.c.bf16 %v1004_v54, %v1003_v44  ;;  %v1005_v56 = vld [vmem:[%s2858_s12 + $0x50] sm:$0xff]  ;;  %v1010_v62 = vld [vmem:[%s2858_s12 + $0x78] sm:$0xff]  ;;  %v1229_v52 = vld [vmem:[%s2857_s11] ss:$0 sm:$0xff] }
 0x23c   :  { %1590 = vmatprep.subr.bf16.mxu0 %v1589_v59  ;;  %v1629_v58 = vpack.c.bf16 %v1006_v57, %v1005_v56  ;;  %v1007_v59 = vld [vmem:[%s2858_s12 + $0x60] sm:$0xff]  ;;  %v1114_v5 = vld [vmem:[%s2860_s14 + $0x98] sm:$0xff]  ;;  %v1125_v57 = vld [vmem:[%s2860_s14 + $0xf0] sm:$0xff] }
 0x23d   :  { %v740_v6 = vmax.f32 %v731_v46, %v732_v1  ;;  %v1632_v45 = vpack.c.bf16 %v1008_v60, %v1007_v59  ;;  %v1112_v46 = vld [vmem:[%s2860_s14 + $0x88] sm:$0xff]  ;;  %v1095_v1 = vld [vmem:[%s2860_s14] sm:$0xff]  ;;  %v1109_v60 = vld [vmem:[%s2860_s14 + $0x70] sm:$0xff] }
 0x23e   :  { %v1107_v54 = vld [vmem:[%s2860_s14 + $0x60] sm:$0xff] }
 0x23f   :  { %v744_v47 = vmax.f32 %v739_v61, %v740_v6  ;;  %1592 = vmatpush3.bf16.msra.mxu0 %v1591_v2  ;;  %v1009_v61 = vld [vmem:[%s2858_s12 + $0x70] sm:$0xff]  ;;  %v1637_v2 = vpack.c.bf16 %v1112_v46, %v1111_v41 }
 0x240   :  { %1594 = vmatprep.subr.bf16.mxu0 %v1593_v3  ;;  %v1635_v0 = vpack.c.bf16 %v1010_v62, %v1009_v61  ;;  %v1096_v3 = vld [vmem:[%s2860_s14 + $0x8] sm:$0xff]  ;;  %v1230_v62 = vld [vmem:[%s2859_s13] ss:$0 sm:$0xff] }
 0x241   :  { %v755_v13 = vmul.f32 %v2553_v16, %v744_v47  ;;  %v1614_v16 = vpack.c.bf16 %v996_v35, %v995_v34  ;;  %v1639_v42 = vpack.c.bf16 %v1096_v3, %v1095_v1  ;;  %v1115_v47 = vld [vmem:[%s2860_s14 + $0xa0] sm:$0xff]  ;;  %1638 = vmatprep.subr.bf16.mxu1 %v1637_v2 }
 0x243   :  { %1596 = vmatpush3.bf16.msra.mxu0 %v1595_v10  ;;  %v766_v49 = vadd.f32 %v2571_v26, %v755_v13  ;;  %v998_v26 = vld [vmem:[%s2858_s12 + $0x18] sm:$0xff]  ;;  %v1116_v10 = vld [vmem:[%s2860_s14 + $0xa8] sm:$0xff]  ;;  %1640 = vmatpush3.bf16.msra.mxu1 %v1639_v42 }
 0x244   :  { %1598 = vmatprep.subr.bf16.mxu0 %v1597_v11  ;;  %v1617_v38 = vpack.c.bf16 %v998_v26, %v997_v36  ;;  %v1643_v11 = vpack.c.bf16 %v1098_v9, %v1097_v8  ;;  %v1645_v48 = vpack.c.bf16 %v1116_v10, %v1115_v47  ;;  %v1100_v13 = vld [vmem:[%s2860_s14 + $0x28] sm:$0xff] }
 0x245   :  { %972 = vmatprep.mubr.f32.mxu0 %v766_v49  ;;  %v1647_v49 = vpack.c.bf16 %v1100_v13, %v1099_v12 }
 0x247   :  { %1600 = vmatpush3.bf16.msra.mxu0 %v1599_v50  ;;  %v1649_v50 = vpack.c.bf16 %v1118_v17, %v1117_v14 }
 0x248   :  { %1602 = vmatprep.subr.bf16.mxu0 %v1601_v15  ;;  %v1101_v15 = vld [vmem:[%s2860_s14 + $0x30] sm:$0xff] }
 0x249   :  { %v1651_v4 = vpack.c.bf16 %v1102_v18, %v1101_v15 }
 0x24b   :  { %1604 = vmatpush3.bf16.msra.mxu0 %v1603_v20  ;;  %v1653_v20 = vpack.c.bf16 %v1120_v19, %v1119_v63 }
 0x24c   :  { %1606 = vmatprep.subr.bf16.mxu0 %v1605_v21  ;;  %v1103_v21 = vld [vmem:[%s2860_s14 + $0x40] sm:$0xff] }
 0x24d   :  { %v1655_v25 = vpack.c.bf16 %v1104_v22, %v1103_v21 }
 0x24f   :  { %1608 = vmatpush3.bf16.msra.mxu0 %v1607_v27  ;;  %v1657_v27 = vpack.c.bf16 %v1122_v24, %v1121_v23 }
 0x250   :  { %1610 = vmatprep.subr.bf16.mxu0 %v1609_v28  ;;  %v1105_v28 = vld [vmem:[%s2860_s14 + $0x50] sm:$0xff] }
 0x251   :  { %v1659_v32 = vpack.c.bf16 %v1106_v29, %v1105_v28 }
 0x253   :  { %1612 = vmatpush3.bf16.msra.mxu0 %v1611_v31  ;;  %v1124_v31 = vld [vmem:[%s2860_s14 + $0xe8] sm:$0xff] }
 0x254   :  { %1613 = vmatprep.subr.bf16.mxu0 %v1730_v37 }
 0x256   :  { %973 = vmatmul.mubr.f32.vlgmr.msra.gmra.mrb[34].mxu0 %v765_v33  ;;  %v1661_v33 = vpack.c.bf16 %v1124_v31, %v1123_v30 }
 0x257   :  { %1615 = vmatpush3.bf16.msra.mxu0 %v1614_v16  ;;  %1386 = vmatprep.mubr.msk.f32.mxu0 %vm1731_vm0, %v1729_v7  ;;  %v1113_v7 = vld [vmem:[%s2860_s14 + $0x90] sm:$0xff] }
 0x258   :  { %1616 = vmatprep.subr.bf16.mxu0 %v1730_v37  ;;  %v1641_v6 = vpack.c.bf16 %v1114_v5, %v1113_v7 }
 0x25a   :  { %1642 = vmatprep.subr.bf16.mxu1 %v1641_v6 }
 0x25b   :  { %1618 = vmatpush3.bf16.msra.mxu0 %v1617_v38  ;;  %1644 = vmatpush3.bf16.msra.mxu1 %v1643_v11 }
 0x25c   :  { %1619 = vmatprep.subr.bf16.mxu0 %v1730_v37  ;;  %1646 = vmatprep.subr.bf16.mxu1 %v1645_v48 }
 0x25f   :  { %1621 = vmatpush3.bf16.msra.mxu0 %v1620_v51  ;;  %1648 = vmatpush3.bf16.msra.mxu1 %v1647_v49  ;;  %v1228_v51 = vld [vmem:[%s2856_s10] ss:$0 sm:$0xff] }
 0x260   :  { %1622 = vmatprep.subr.bf16.mxu0 %v1730_v37  ;;  %1650 = vmatprep.subr.bf16.mxu1 %v1649_v50 }
 0x263   :  { %1624 = vmatpush3.bf16.msra.mxu0 %v1623_v53  ;;  %1652 = vmatpush3.bf16.msra.mxu1 %v1651_v4 }
 0x264   :  { %1625 = vmatprep.subr.bf16.mxu0 %v1730_v37  ;;  %1654 = vmatprep.subr.bf16.mxu1 %v1653_v20 }
 0x267   :  { %1627 = vmatpush3.bf16.msra.mxu0 %v1626_v55  ;;  %1656 = vmatpush3.bf16.msra.mxu1 %v1655_v25  ;;  %v1108_v55 = vld [vmem:[%s2860_s14 + $0x68] sm:$0xff] }
 0x268   :  { %1628 = vmatprep.subr.bf16.mxu0 %v1730_v37  ;;  %1658 = vmatprep.subr.bf16.mxu1 %v1657_v27  ;;  %v1663_v56 = vpack.c.bf16 %v1108_v55, %v1107_v54 }
 0x26b   :  { %1630 = vmatpush3.bf16.msra.mxu0 %v1629_v58  ;;  %1660 = vmatpush3.bf16.msra.mxu1 %v1659_v32  ;;  %v1126_v58 = vld [vmem:[%s2860_s14 + $0xf8] sm:$0xff] }
 0x26c   :  { %1631 = vmatprep.subr.bf16.mxu0 %v1730_v37  ;;  %1662 = vmatprep.subr.bf16.mxu1 %v1661_v33  ;;  %v1665_v59 = vpack.c.bf16 %v1126_v58, %v1125_v57 }
 0x26f   :  { %1633 = vmatpush3.bf16.msra.mxu0 %v1632_v45  ;;  %1664 = vmatpush3.bf16.msra.mxu1 %v1663_v56  ;;  %v1110_v45 = vld [vmem:[%s2860_s14 + $0x78] sm:$0xff] }
 0x270   :  { %1634 = vmatprep.subr.bf16.mxu0 %v1730_v37  ;;  %v1227_v37 = vld [vmem:[%s2855_s9] ss:$0 sm:$0xff]  ;;  %v1667_v61 = vpack.c.bf16 %v1110_v45, %v1109_v60  ;;  %1666 = vmatprep.subr.bf16.mxu1 %v1665_v59 }
 0x273   :  { %1636 = vmatpush3.bf16.msra.mxu0 %v1635_v0  ;;  %1668 = vmatpush3.bf16.msra.mxu1 %v1667_v61 }
 0x309   :  { %v1264_v34 = vpop.f32.mrb[32].mxu0 }
 0x30a   :  { %v1265_v35 = vpop.f32.mrb[33].mxu0 }
 0x30b   :  { %v1266_v36 = vadd.f32 %v1265_v35, %v1264_v34 }
 0x30d   :  { %v905_v38 = vadd.f32 %v1266_v36, %v1227_v37 }
 0x329   :  { %v1299_v16 = vpop.f32.mrb[34].mxu0 }
 0x32a   :  { %v1300_v26 = vpop.f32.mrb[35].mxu0 }
 0x32b   :  { %v1301_v39 = vadd.f32 %v1300_v26, %v1299_v16 }
 0x32d   :  { %v975_v40 = vadd.f32 %v1301_v39, %v905_v38 }
 0x32f   :  { %v978_v43 = vmax.f32 %v975_v40, 0.0 }
 0x331   :  { %v986_v53 = vmul.f32 %v1228_v51, %v978_v43 }
 0x333   :  { %v994_v44 = vadd.f32 %v1229_v52, %v986_v53 }
 0x335   :  { %1387 = vmatmul.mubr.f32.vlgmr.msra.gmra.mrb[36].mxu0 %v994_v44 }
 0x408   :  { %v1084_v0 = vpop.f32.mrb[36].mxu0 }
 0x409   :  { %v1085_v41 = vadd.f32 %v1230_v62, %v1084_v0  ;;  %v1388_v46 = vpop.f32.mrb[37].mxu0 }
 0x40b   :  { %v1088_v1 = vmax.f32 %v1085_v41, 0.0 }
 0x40d   :  { %1089 = vst [vmem:[#allocation2] sm:$0xff] %v1088_v1  ;;  %v1091_v2 = vrot.slane %v1088_v1, 2 }
 0x40f   :  { %1198 = vmatprep.mubr.f32.mxu1 %v1091_v2 }
 0x410   :  { %1199 = vmatmul.mubr.f32.vlgmr.msra.gmra.mrb[16].mxu1 %v1088_v1 }
 0x411   :  { %1716 = shalt.err (!%p1713_p4)
}
 0x412   :  { %s1717_s29 = scalar_lea.hbm %s2863_s17, 128 }
 0x413   :  { %p1718_p5 = scmp.ne.s32.totalorder %s2863_s17, %s1717_s29  ;;  %p1721_p6 = scmp.lt.u32.totalorder %s1717_s29, %s2863_s17 }
 0x415   :  { %p1723_p7 = pnand %p1721_p6, %p1718_p5 }
 0x417   :  { %1726 = shalt.err (!%p1723_p7)
}
 0x418   :  { %1216 = dma.vmem_to_hbm [thread:$0]  %s1214_s28, 128, %s2863_s17, [#allocation3]   ;;  %v1231_v7 = vld [vmem:[%s2861_s15] ss:$0 sm:$0xff] }
 0x4e3   :  { %v1351_v3 = vpop.f32.mrb[16].mxu1 }
 0x4e4   :  { %v1352_v5 = vpop.f32.mrb[17].mxu1 }
 0x4e5   :  { %v1353_v42 = vadd.f32 %v1352_v5, %v1351_v3 }
 0x4e7   :  { %v1201_v6 = vadd.f32 %v1353_v42, %v1231_v7 }
 0x4e9   :  { %1204 = vst [vmem:[%s2862_s16] sm:$0xff] %v1201_v6 }
 0x4ea   :  { %1727 = dma.done.wait [#allocation3], 128  }
 0x4eb   :  { %1728 = vsyncadd [#allocation3], 4294967168 }
 0x4ec   :  { %1222 = vsyncpa [#allocation3], 1 }

</bundles_post_ra>
